<compile_context>
chip_gen: v7x
topology: tpu7x:2x2x1
jax: 0.10.0
libtpu: 0.0.40
codegen_flags: <defaults>
</compile_context>

<pallas_src>
import functools

import jax
import jax.numpy as jnp
from jax.experimental import pallas as pl
from jax.experimental.pallas import tpu as pltpu


def _pick_tile(n, target=256):
    """Largest tile <= target that divides n (multiple of 8 if possible), else n."""
    if n <= target:
        return n
    t = target - (target % 8)
    while t >= 8:
        if n % t == 0:
            return t
        t -= 8
    return n


# ----------------------------------------------------------------------------
# 1) Weighted sum over the 25 SSL layers (softmax weights), tiled + accumulated
# ----------------------------------------------------------------------------
def _wsum_kernel(w_ref, x_ref, o_ref, acc_ref):
    l = pl.program_id(2)

    @pl.when(l == 0)
    def _():
        acc_ref[...] = jnp.zeros_like(acc_ref)

    w = w_ref[0, :, :1]                                   # [1,1] fp32 scalar weight
    acc_ref[...] += w * x_ref[0, 0].astype(jnp.float32)   # [tt, A]

    @pl.when(l == pl.num_programs(2) - 1)
    def _():
        o_ref[0] = acc_ref[...].astype(o_ref.dtype)


def weighted_layer_sum(norm_w, audio_feats, out_dtype=jnp.bfloat16):
    """(softmax(weights)[None,:,None,None] * audio_feats).sum(dim=1) -> [B,T,A]."""
    B, L, T, A = audio_feats.shape
    tt = _pick_tile(T, 256)
    w_b = jnp.broadcast_to(norm_w.astype(jnp.float32)[:, None, None], (L, 1, 128))
    return pl.pallas_call(
        _wsum_kernel,
        out_shape=jax.ShapeDtypeStruct((B, T, A), out_dtype),
        grid=(B, T // tt, L),
        in_specs=[
            pl.BlockSpec((1, 1, 128), lambda b, j, l: (l, 0, 0)),
            pl.BlockSpec((1, 1, tt, A), lambda b, j, l: (b, l, j, 0)),
        ],
        out_specs=pl.BlockSpec((1, tt, A), lambda b, j, l: (b, j, 0)),
        scratch_shapes=[pltpu.VMEM((tt, A), jnp.float32)],
        compiler_params=pltpu.CompilerParams(
            dimension_semantics=("parallel", "parallel", "arbitrary")),
    )(w_b, audio_feats)


# ----------------------------------------------------------------------------
# 2) Conv1d(A -> D, k=3, stride=2, pad=1) as two accumulated matmuls (no unfold)
# ----------------------------------------------------------------------------
def _conv_kernel(x_ref, w01_ref, w2_ref, b_ref, o_ref):
    Tout = o_ref.shape[1]
    A = w2_ref.shape[0]
    x = x_ref[0]                         # [Th, 2A]; row t = [xp[2t], xp[2t+1]]
    x01 = x[:Tout, :]                    # taps 0 & 1, K = 2A
    x2 = x[1:Tout + 1, :A]               # tap 2 = xp[2t+2], K = A
    acc = jnp.dot(x01, w01_ref[...], preferred_element_type=jnp.float32)
    acc = acc + jnp.dot(x2, w2_ref[...], preferred_element_type=jnp.float32)
    o_ref[0] = (acc + b_ref[...]).astype(o_ref.dtype)


def conv1d_downsample(weighted, w01, w2, bias):
    """weighted: [B,T,A] -> [B,Tout,D] with Tout = (T-1)//2 + 1."""
    B, T, A = weighted.shape
    D = w01.shape[1]
    Tout = (T - 1) // 2 + 1
    Th = Tout + 1
    pad_back = 2 * Th - 1 - T                       # pad=1 front, rest zeros at back
    xp = jnp.pad(weighted, ((0, 0), (1, pad_back), (0, 0)))
    xr = xp.reshape(B, Th, 2 * A)                   # free row-major pair-reshape
    # Per-batch full-time blocks: at real shapes (T~2000, A=1024, D=512) this is
    # only a few MB of VMEM; tile Tout as well if sequences get much longer.
    return pl.pallas_call(
        _conv_kernel,
        out_shape=jax.ShapeDtypeStruct((B, Tout, D), jnp.bfloat16),
        grid=(B,),
        in_specs=[
            pl.BlockSpec((1, Th, 2 * A), lambda b: (b, 0, 0)),
            pl.BlockSpec((2 * A, D), lambda b: (0, 0)),
            pl.BlockSpec((A, D), lambda b: (0, 0)),
            pl.BlockSpec((1, D), lambda b: (0, 0)),
        ],
        out_specs=pl.BlockSpec((1, Tout, D), lambda b: (b, 0, 0)),
        compiler_params=pltpu.CompilerParams(dimension_semantics=("parallel",)),
    )(xr, w01, w2, bias.reshape(1, D))


# ----------------------------------------------------------------------------
# 3) Generic M-tiled linear (bf16 operands, fp32 accumulate, weights resident)
# ----------------------------------------------------------------------------
def _linear_kernel(x_ref, w_ref, b_ref, o_ref):
    acc = jnp.dot(x_ref[...], w_ref[...], preferred_element_type=jnp.float32)
    o_ref[...] = (acc + b_ref[...]).astype(o_ref.dtype)


def linear(x2d, w, b, out_dtype=jnp.bfloat16, tm_target=256):
    M, K = x2d.shape
    N = w.shape[1]
    tm = _pick_tile(M, tm_target)
    return pl.pallas_call(
        _linear_kernel,
        out_shape=jax.ShapeDtypeStruct((M, N), out_dtype),
        grid=(M // tm,),
        in_specs=[
            pl.BlockSpec((tm, K), lambda i: (i, 0)),
            pl.BlockSpec((K, N), lambda i: (0, 0)),      # K<=2048 -> weight resident
            pl.BlockSpec((1, N), lambda i: (0, 0)),
        ],
        out_specs=pl.BlockSpec((tm, N), lambda i: (i, 0)),
        compiler_params=pltpu.CompilerParams(dimension_semantics=("parallel",)),
    )(x2d, w, b.reshape(1, N))


# ----------------------------------------------------------------------------
# 4) Multi-head attention core: heads batched in a single einsum, Tq-tiled
# ----------------------------------------------------------------------------
def _mha_kernel(q_ref, k_ref, v_ref, o_ref, *, scale):
    q = q_ref[0]                         # [H, tq, hd] bf16
    k = k_ref[0]                         # [H, Tk, hd] bf16
    v = v_ref[0]
    s = jnp.einsum("hqd,hkd->hqk", q, k,
                   preferred_element_type=jnp.float32) * scale
    m = jnp.max(s, axis=-1, keepdims=True)
    p = jnp.exp(s - m)
    denom = jnp.sum(p, axis=-1, keepdims=True)
    p = p * pl.reciprocal(denom, approx=True)            # divide on the EUP slot
    o = jnp.einsum("hqk,hkd->hqd", p.astype(v.dtype), v,
                   preferred_element_type=jnp.float32)
    o_ref[0] = o.astype(o_ref.dtype)


def multihead_attention_core(q_h, k_h, v_h):
    """q_h: [B,H,Tq,hd]; k_h/v_h: [B,H,Tk,hd] -> [B,H,Tq,hd]."""
    B, H, Tq, hd = q_h.shape
    Tk = k_h.shape[2]
    tq = _pick_tile(Tq, 256)
    scale = 1.0 / (hd ** 0.5)
    return pl.pallas_call(
        functools.partial(_mha_kernel, scale=scale),
        out_shape=jax.ShapeDtypeStruct((B, H, Tq, hd), jnp.bfloat16),
        grid=(B, Tq // tq),
        in_specs=[
            pl.BlockSpec((1, H, tq, hd), lambda b, j: (b, 0, j, 0)),
            pl.BlockSpec((1, H, Tk, hd), lambda b, j: (b, 0, 0, 0)),
            pl.BlockSpec((1, H, Tk, hd), lambda b, j: (b, 0, 0, 0)),
        ],
        out_specs=pl.BlockSpec((1, H, tq, hd), lambda b, j: (b, 0, j, 0)),
        compiler_params=pltpu.CompilerParams(
            dimension_semantics=("parallel", "parallel")),
    )(q_h, k_h, v_h)


# ----------------------------------------------------------------------------
# 5) Fused attention epilogue: out-proj -> linear1 -> LayerNorm (eval dropout=id)
# ----------------------------------------------------------------------------
def _attn_post_kernel(x_ref, wo_ref, bo_ref, w1_ref, b1_ref, g_ref, bt_ref, o_ref):
    h = jnp.dot(x_ref[...], wo_ref[...], preferred_element_type=jnp.float32)
    h = h + bo_ref[...]
    h = jnp.dot(h.astype(jnp.bfloat16), w1_ref[...],
                preferred_element_type=jnp.float32) + b1_ref[...]
    mean = jnp.mean(h, axis=-1, keepdims=True)
    var = jnp.mean((h - mean) ** 2, axis=-1, keepdims=True)
    o_ref[...] = ((h - mean) * jax.lax.rsqrt(var + 1e-5) * g_ref[...]
                  + bt_ref[...]).astype(o_ref.dtype)


def attn_output_block(x2d, wo, bo, w1, b1, gamma, beta,
                      out_dtype=jnp.bfloat16, tm_target=256):
    M, D = x2d.shape
    tm = _pick_tile(M, tm_target)
    full = lambda i: (0, 0)
    return pl.pallas_call(
        _attn_post_kernel,
        out_shape=jax.ShapeDtypeStruct((M, D), out_dtype),
        grid=(M // tm,),
        in_specs=[
            pl.BlockSpec((tm, D), lambda i: (i, 0)),
            pl.BlockSpec((D, D), full), pl.BlockSpec((1, D), full),
            pl.BlockSpec((D, D), full), pl.BlockSpec((1, D), full),
            pl.BlockSpec((1, D), full), pl.BlockSpec((1, D), full),
        ],
        out_specs=pl.BlockSpec((tm, D), lambda i: (i, 0)),
        compiler_params=pltpu.CompilerParams(dimension_semantics=("parallel",)),
    )(x2d, wo, bo.reshape(1, D), w1, b1.reshape(1, D),
      gamma.reshape(1, D), beta.reshape(1, D))


# ----------------------------------------------------------------------------
# LatentPredictor forward (mfcc=False branch, eval mode)
# ----------------------------------------------------------------------------
NHEAD_CROSS = 8  # attentionLayer(d_model=latent_dim, nhead=8)


def latent_predictor_forward(params, audio_feats, refer_visual_feats):
    """audio_feats: [B, 25, T, audio_dim]; refer_visual_feats: [B, Tref, latent_dim]."""
    B, L, T, A = audio_feats.shape
    D = params["out_w"].shape[0]
    H = NHEAD_CROSS
    hd = D // H
    bf16 = jnp.bfloat16

    # ---- weighted sum over the 25 SSL layers ----
    norm_w = jax.nn.softmax(params["layer_weights"])                # tiny, plain JAX
    weighted = weighted_layer_sum(norm_w, audio_feats)              # [B,T,A] bf16

    # ---- Conv1d downsample (k=3, stride=2, pad=1) ----
    # PyTorch Conv1d weight is [D, A, 3]; here conv_w01 = concat(W[:,:,0].T, W[:,:,1].T)
    # -> [2A, D] and conv_w2 = W[:,:,2].T -> [A, D] (transpose when importing weights).
    x = conv1d_downsample(weighted,
                          params["conv_w01"].astype(bf16),
                          params["conv_w2"].astype(bf16),
                          params["conv_b"])                         # [B,Tout,D] bf16
    Tout = x.shape[1]

    # TODO(synk): reference_encoder / speech_encoder / coarse_decoder are ESPnet
    # ConformerEncoders whose source was not provided; they are identity passes here.
    ref = refer_visual_feats.astype(bf16)                           # [B,Tref,D]
    Tref = ref.shape[1]

    # ---- cross_attention = attentionLayer(src=ref, tar=x), eval mode ----
    q = linear(x.reshape(B * Tout, D), params["mha_wq"].astype(bf16), params["mha_bq"])
    wkv = jnp.concatenate([params["mha_wk"], params["mha_wv"]], axis=1).astype(bf16)
    bkv = jnp.concatenate([params["mha_bk"], params["mha_bv"]], axis=0)
    kv = linear(ref.reshape(B * Tref, D), wkv, bkv)                 # fused K|V proj
    k, v = kv[:, :D], kv[:, D:]

    q_h = q.reshape(B, Tout, H, hd).transpose(0, 2, 1, 3)           # [B,H,Tout,hd]
    k_h = k.reshape(B, Tref, H, hd).transpose(0, 2, 1, 3)
    v_h = v.reshape(B, Tref, H, hd).transpose(0, 2, 1, 3)
    attn_h = multihead_attention_core(q_h, k_h, v_h)                # [B,H,Tout,hd]
    attn = attn_h.transpose(0, 2, 1, 3).reshape(B * Tout, D)

    # out-proj -> linear1 -> norm1 (NO residual, exactly as in attentionLayer.forward)
    h = attn_output_block(attn,
                          params["mha_wo"].astype(bf16), params["mha_bo"],
                          params["lin1_w"].astype(bf16), params["lin1_b"],
                          params["ln1_g"], params["ln1_b"])         # [B*Tout,D] bf16

    # speech_encoder / coarse_decoder: identity (see TODO above)

    # ---- out_proj ----
    y = linear(h, params["out_w"].astype(bf16), params["out_b"], out_dtype=jnp.float32)
    return y.reshape(B, Tout, D)


# ----------------------------------------------------------------------------
# Deterministic parameter construction + demo
# ----------------------------------------------------------------------------
def make_params(key, audio_dim, latent_dim):
    ks = jax.random.split(key, 12)
    s = 0.02
    A, D = audio_dim, latent_dim
    return {
        # self.weights = nn.Parameter(torch.zeros(25))
        "layer_weights": jnp.zeros((25,), jnp.float32),
        # Conv1d(A, D, k=3) stored as taps {0,1} [2A,D] and tap 2 [A,D]
        "conv_w01": s * jax.random.normal(ks[0], (2 * A, D), jnp.float32),
        "conv_w2": s * jax.random.normal(ks[1], (A, D), jnp.float32),
        "conv_b": s * jax.random.normal(ks[2], (D,), jnp.float32),
        # cross_attention.self_attn (MultiheadAttention, nhead=8); weights stored
        # in (in, out) orientation, i.e. the transpose of torch's [out, in].
        "mha_wq": s * jax.random.normal(ks[3], (D, D), jnp.float32),
        "mha_bq": jnp.zeros((D,), jnp.float32),
        "mha_wk": s * jax.random.normal(ks[4], (D, D), jnp.float32),
        "mha_bk": jnp.zeros((D,), jnp.float32),
        "mha_wv": s * jax.random.normal(ks[5], (D, D), jnp.float32),
        "mha_bv": jnp.zeros((D,), jnp.float32),
        "mha_wo": s * jax.random.normal(ks[6], (D, D), jnp.float32),
        "mha_bo": jnp.zeros((D,), jnp.float32),
        # cross_attention.linear1 / norm1
        "lin1_w": s * jax.random.normal(ks[7], (D, D), jnp.float32),
        "lin1_b": s * jax.random.normal(ks[8], (D,), jnp.float32),
        "ln1_g": jnp.ones((D,), jnp.float32),
        "ln1_b": jnp.zeros((D,), jnp.float32),
        # out_proj
        "out_w": s * jax.random.normal(ks[9], (D, D), jnp.float32),
        "out_b": s * jax.random.normal(ks[10], (D,), jnp.float32),
    }


if __name__ == "__main__":
    key = jax.random.PRNGKey(0)
    # small demo shapes (real model: A=1024, D=512, long T)
    B, L, T, A, D, Tref = 2, 25, 16, 64, 128, 8

    k_in, k_ref, k_par = jax.random.split(key, 3)
    audio_feats = jax.random.normal(k_in, (B, L, T, A), jnp.float32)
    refer_visual_feats = jax.random.normal(k_ref, (B, Tref, D), jnp.float32)
    params = make_params(k_par, A, D)

    fwd = jax.jit(latent_predictor_forward)
    y = fwd(params, audio_feats, refer_visual_feats)
    jax.block_until_ready(y)

    Tout = (T - 1) // 2 + 1
    assert y.shape == (B, Tout, D), y.shape
    assert bool(jnp.all(jnp.isfinite(y)))
    print("KERNEL_OK")
</pallas_src>

<mosaic_0001>
module attributes {stable_mosaic.version = 11 : i64} {
  func.func @_linear_kernel(%arg0: i32, %arg1: memref<16x128xbf16, #tpu.memory_space<vmem>>, %arg2: memref<128x256xbf16, #tpu.memory_space<vmem>>, %arg3: memref<1x256xf32, #tpu.memory_space<vmem>>, %arg4: memref<16x256xbf16, #tpu.memory_space<vmem>>) attributes {dimension_semantics = [#tpu.dimension_semantics<parallel>], iteration_bounds = array<i64: 1>, scalar_prefetch = 0 : i64, scratch_operands = 0 : i64, tpu.core_type = #tpu.core_type<tc>, window_params = [{transform_indices = @transform_0, window_bounds = array<i64: 16, 128>}, {pipeline_mode = #tpu.pipeline_mode<synchronous>, transform_indices = @transform_1, window_bounds = array<i64: 128, 256>}, {pipeline_mode = #tpu.pipeline_mode<synchronous>, transform_indices = @transform_2, window_bounds = array<i64: 1, 256>}, {transform_indices = @transform_3, window_bounds = array<i64: 16, 256>}]} {
    %c0 = arith.constant 0 : index
    %c0_0 = arith.constant 0 : index
    %0 = vector.load %arg1[%c0, %c0_0] : memref<16x128xbf16, #tpu.memory_space<vmem>>, vector<16x128xbf16>
    %c0_1 = arith.constant 0 : index
    %c0_2 = arith.constant 0 : index
    %1 = vector.load %arg2[%c0_1, %c0_2] : memref<128x256xbf16, #tpu.memory_space<vmem>>, vector<128x256xbf16>
    %cst = arith.constant dense<0.000000e+00> : vector<16x256xf32>
    %2 = tpu.matmul %0, %1, %cst {dimension_numbers = #tpu.dot_dimension_numbers<[1], [0], [0], [1], [0, 0, 1, 1], [], []>} : vector<16x128xbf16>, vector<128x256xbf16>, vector<16x256xf32> -> vector<16x256xf32>
    %c0_3 = arith.constant 0 : index
    %c0_4 = arith.constant 0 : index
    %3 = vector.load %arg3[%c0_3, %c0_4] : memref<1x256xf32, #tpu.memory_space<vmem>>, vector<1x256xf32>
    %4 = vector.broadcast %3 : vector<1x256xf32> to vector<16x256xf32>
    %5 = arith.addf %2, %4 : vector<16x256xf32>
    %6 = arith.truncf %5 : vector<16x256xf32> to vector<16x256xbf16>
    %c0_5 = arith.constant 0 : index
    %c0_6 = arith.constant 0 : index
    %7 = vector.load %arg4[%c0_5, %c0_6] : memref<16x256xbf16, #tpu.memory_space<vmem>>, vector<16x256xbf16>
    tpu.vector_store %arg4[%c0_5, %c0_6], %6 {strides = array<i32>} : memref<16x256xbf16, #tpu.memory_space<vmem>>, vector<16x256xbf16>,
    return
  }
  func.func @transform_0(%arg0: i32) -> (i32, i32) {
    %c0_i32 = arith.constant 0 : i32
    %c0_i32_0 = arith.constant 0 : i32
    return %arg0, %c0_i32 : i32, i32
  }
  func.func @transform_1(%arg0: i32) -> (i32, i32) {
    %c0_i32 = arith.constant 0 : i32
    %c0_i32_0 = arith.constant 0 : i32
    %c0_i32_1 = arith.constant 0 : i32
    return %c0_i32, %c0_i32_0 : i32, i32
  }
  func.func @transform_2(%arg0: i32) -> (i32, i32) {
    %c0_i32 = arith.constant 0 : i32
    %c0_i32_0 = arith.constant 0 : i32
    %c0_i32_1 = arith.constant 0 : i32
    return %c0_i32, %c0_i32_0 : i32, i32
  }
  func.func @transform_3(%arg0: i32) -> (i32, i32) {
    %c0_i32 = arith.constant 0 : i32
    %c0_i32_0 = arith.constant 0 : i32
    return %arg0, %c0_i32 : i32, i32
  }
}

module attributes {stable_mosaic.version = 11 : i64} {
  func.func @_conv_kernel(%arg0: i32, %arg1: memref<1x9x128xbf16, #tpu.memory_space<vmem>>, %arg2: memref<128x128xbf16, #tpu.memory_space<vmem>>, %arg3: memref<64x128xbf16, #tpu.memory_space<vmem>>, %arg4: memref<1x128xf32, #tpu.memory_space<vmem>>, %arg5: memref<1x8x128xbf16, #tpu.memory_space<vmem>>) attributes {dimension_semantics = [#tpu.dimension_semantics<parallel>], iteration_bounds = array<i64: 2>, scalar_prefetch = 0 : i64, scratch_operands = 0 : i64, tpu.core_type = #tpu.core_type<tc>, window_params = [{transform_indices = @transform_0, window_bounds = array<i64: 1, 9, 128>}, {pipeline_mode = #tpu.pipeline_mode<synchronous>, transform_indices = @transform_1, window_bounds = array<i64: 128, 128>}, {pipeline_mode = #tpu.pipeline_mode<synchronous>, transform_indices = @transform_2, window_bounds = array<i64: 64, 128>}, {pipeline_mode = #tpu.pipeline_mode<synchronous>, transform_indices = @transform_3, window_bounds = array<i64: 1, 128>}, {transform_indices = @transform_4, window_bounds = array<i64: 1, 8, 128>}]} {
    %c0 = arith.constant 0 : index
    %c0_0 = arith.constant 0 : index
    %c0_1 = arith.constant 0 : index
    %0 = vector.load %arg1[%c0, %c0_0, %c0_1] : memref<1x9x128xbf16, #tpu.memory_space<vmem>>, vector<1x9x128xbf16>
    %1 = vector.shape_cast %0 : vector<1x9x128xbf16> to vector<9x128xbf16>
    %2 = vector.extract_strided_slice %1 {offsets = [0, 0], sizes = [8, 128], strides = [1, 1]} : vector<9x128xbf16> to vector<8x128xbf16>
    %3 = vector.extract_strided_slice %1 {offsets = [1, 0], sizes = [8, 64], strides = [1, 1]} : vector<9x128xbf16> to vector<8x64xbf16>
    %c0_2 = arith.constant 0 : index
    %c0_3 = arith.constant 0 : index
    %4 = vector.load %arg2[%c0_2, %c0_3] : memref<128x128xbf16, #tpu.memory_space<vmem>>, vector<128x128xbf16>
    %cst = arith.constant dense<0.000000e+00> : vector<8x128xf32>
    %5 = tpu.matmul %2, %4, %cst {dimension_numbers = #tpu.dot_dimension_numbers<[1], [0], [0], [1], [0, 0, 1, 1], [], []>} : vector<8x128xbf16>, vector<128x128xbf16>, vector<8x128xf32> -> vector<8x128xf32>
    %c0_4 = arith.constant 0 : index
    %c0_5 = arith.constant 0 : index
    %6 = vector.load %arg3[%c0_4, %c0_5] : memref<64x128xbf16, #tpu.memory_space<vmem>>, vector<64x128xbf16>
    %cst_6 = arith.constant dense<0.000000e+00> : vector<8x128xf32>
    %7 = tpu.matmul %3, %6, %cst_6 {dimension_numbers = #tpu.dot_dimension_numbers<[1], [0], [0], [1], [0, 0, 1, 1], [], []>} : vector<8x64xbf16>, vector<64x128xbf16>, vector<8x128xf32> -> vector<8x128xf32>
    %8 = arith.addf %5, %7 : vector<8x128xf32>
    %c0_7 = arith.constant 0 : index
    %c0_8 = arith.constant 0 : index
    %9 = vector.load %arg4[%c0_7, %c0_8] : memref<1x128xf32, #tpu.memory_space<vmem>>, vector<1x128xf32>
    %10 = vector.broadcast %9 : vector<1x128xf32> to vector<8x128xf32>
    %11 = arith.addf %8, %10 : vector<8x128xf32>
    %12 = arith.truncf %11 : vector<8x128xf32> to vector<8x128xbf16>
    %c0_9 = arith.constant 0 : index
    %c0_10 = arith.constant 0 : index
    %c0_11 = arith.constant 0 : index
    %13 = vector.load %arg5[%c0_9, %c0_10, %c0_11] : memref<1x8x128xbf16, #tpu.memory_space<vmem>>, vector<1x8x128xbf16>
    %14 = vector.shape_cast %13 : vector<1x8x128xbf16> to vector<8x128xbf16>
    %15 = vector.shape_cast %12 : vector<8x128xbf16> to vector<1x8x128xbf16>
    tpu.vector_store %arg5[%c0_9, %c0_10, %c0_11], %15 {strides = array<i32>} : memref<1x8x128xbf16, #tpu.memory_space<vmem>>, vector<1x8x128xbf16>,
    return
  }
  func.func @transform_0(%arg0: i32) -> (i32, i32, i32) {
    %c0_i32 = arith.constant 0 : i32
    %c0_i32_0 = arith.constant 0 : i32
    %c0_i32_1 = arith.constant 0 : i32
    return %arg0, %c0_i32, %c0_i32_0 : i32, i32, i32
  }
  func.func @transform_1(%arg0: i32) -> (i32, i32) {
    %c0_i32 = arith.constant 0 : i32
    %c0_i32_0 = arith.constant 0 : i32
    %c0_i32_1 = arith.constant 0 : i32
    return %c0_i32, %c0_i32_0 : i32, i32
  }
  func.func @transform_2(%arg0: i32) -> (i32, i32) {
    %c0_i32 = arith.constant 0 : i32
    %c0_i32_0 = arith.constant 0 : i32
    %c0_i32_1 = arith.constant 0 : i32
    return %c0_i32, %c0_i32_0 : i32, i32
  }
  func.func @transform_3(%arg0: i32) -> (i32, i32) {
    %c0_i32 = arith.constant 0 : i32
    %c0_i32_0 = arith.constant 0 : i32
    %c0_i32_1 = arith.constant 0 : i32
    return %c0_i32, %c0_i32_0 : i32, i32
  }
  func.func @transform_4(%arg0: i32) -> (i32, i32, i32) {
    %c0_i32 = arith.constant 0 : i32
    %c0_i32_0 = arith.constant 0 : i32
    %c0_i32_1 = arith.constant 0 : i32
    return %arg0, %c0_i32, %c0_i32_0 : i32, i32, i32
  }
}

module attributes {stable_mosaic.version = 11 : i64} {
  func.func @_wsum_kernel(%arg0: i32, %arg1: i32, %arg2: i32, %arg3: memref<1x1x128xf32, #tpu.memory_space<vmem>>, %arg4: memref<1x1x16x64xf32, #tpu.memory_space<vmem>>, %arg5: memref<1x16x64xbf16, #tpu.memory_space<vmem>>, %arg6: memref<16x64xf32, #tpu.memory_space<vmem>>) attributes {dimension_semantics = [#tpu.dimension_semantics<parallel>, #tpu.dimension_semantics<parallel>, #tpu.dimension_semantics<arbitrary>], iteration_bounds = array<i64: 2, 1, 25>, scalar_prefetch = 0 : i64, scratch_operands = 1 : i64, tpu.core_type = #tpu.core_type<tc>, window_params = [{transform_indices = @transform_0, window_bounds = array<i64: 1, 1, 128>}, {transform_indices = @transform_1, window_bounds = array<i64: 1, 1, 16, 64>}, {transform_indices = @transform_2, window_bounds = array<i64: 1, 16, 64>}]} {
    %c0_i32 = arith.constant 0 : i32
    %0 = arith.cmpi eq, %arg2, %c0_i32 : i32
    %1 = arith.extui %0 : i1 to i32
    %c0_i32_0 = arith.constant 0 : i32
    %2 = arith.cmpi ne, %1, %c0_i32_0 : i32
    scf.if %2 {
      %cst = arith.constant 0.000000e+00 : f32
      %15 = vector.broadcast %cst : f32 to vector<16x64xf32>
      %c0_12 = arith.constant 0 : index
      %c0_13 = arith.constant 0 : index
      %16 = vector.load %arg6[%c0_12, %c0_13] : memref<16x64xf32, #tpu.memory_space<vmem>>, vector<16x64xf32>
      tpu.vector_store %arg6[%c0_12, %c0_13], %15 {strides = array<i32>} : memref<16x64xf32, #tpu.memory_space<vmem>>, vector<16x64xf32>,
    } else {
    }
    %c0 = arith.constant 0 : index
    %c0_1 = arith.constant 0 : index
    %c0_2 = arith.constant 0 : index
    %3 = vector.load %arg3[%c0, %c0_1, %c0_2] : memref<1x1x128xf32, #tpu.memory_space<vmem>>, vector<1x1x1xf32>
    %4 = vector.shape_cast %3 : vector<1x1x1xf32> to vector<1x1xf32>
    %c0_3 = arith.constant 0 : index
    %c0_4 = arith.constant 0 : index
    %5 = vector.load %arg6[%c0_3, %c0_4] : memref<16x64xf32, #tpu.memory_space<vmem>>, vector<16x64xf32>
    %c0_5 = arith.constant 0 : index
    %c0_6 = arith.constant 0 : index
    %c0_7 = arith.constant 0 : index
    %c0_8 = arith.constant 0 : index
    %6 = vector.load %arg4[%c0_5, %c0_6, %c0_7, %c0_8] : memref<1x1x16x64xf32, #tpu.memory_space<vmem>>, vector<1x1x16x64xf32>
    %7 = vector.shape_cast %6 : vector<1x1x16x64xf32> to vector<16x64xf32>
    %8 = vector.broadcast %4 : vector<1x1xf32> to vector<16x64xf32>
    %9 = arith.mulf %8, %7 : vector<16x64xf32>
    %10 = arith.addf %5, %9 : vector<16x64xf32>
    %c0_9 = arith.constant 0 : index
    %c0_10 = arith.constant 0 : index
    %11 = vector.load %arg6[%c0_9, %c0_10] : memref<16x64xf32, #tpu.memory_space<vmem>>, vector<16x64xf32>
    tpu.vector_store %arg6[%c0_9, %c0_10], %10 {strides = array<i32>} : memref<16x64xf32, #tpu.memory_space<vmem>>, vector<16x64xf32>,
    %c24_i32 = arith.constant 24 : i32
    %12 = arith.cmpi eq, %arg2, %c24_i32 : i32
    %13 = arith.extui %12 : i1 to i32
    %c0_i32_11 = arith.constant 0 : i32
    %14 = arith.cmpi ne, %13, %c0_i32_11 : i32
    scf.if %14 {
      %c0_12 = arith.constant 0 : index
      %c0_13 = arith.constant 0 : index
      %15 = vector.load %arg6[%c0_12, %c0_13] : memref<16x64xf32, #tpu.memory_space<vmem>>, vector<16x64xf32>
      %16 = arith.truncf %15 : vector<16x64xf32> to vector<16x64xbf16>
      %c0_14 = arith.constant 0 : index
      %c0_15 = arith.constant 0 : index
      %c0_16 = arith.constant 0 : index
      %17 = vector.load %arg5[%c0_14, %c0_15, %c0_16] : memref<1x16x64xbf16, #tpu.memory_space<vmem>>, vector<1x16x64xbf16>
      %18 = vector.shape_cast %17 : vector<1x16x64xbf16> to vector<16x64xbf16>
      %19 = vector.shape_cast %16 : vector<16x64xbf16> to vector<1x16x64xbf16>
      tpu.vector_store %arg5[%c0_14, %c0_15, %c0_16], %19 {strides = array<i32>} : memref<1x16x64xbf16, #tpu.memory_space<vmem>>, vector<1x16x64xbf16>,
    } else {
    }
    return
  }
  func.func @transform_0(%arg0: i32, %arg1: i32, %arg2: i32) -> (i32, i32, i32) {
    %c0_i32 = arith.constant 0 : i32
    %c0_i32_0 = arith.constant 0 : i32
    %c0_i32_1 = arith.constant 0 : i32
    return %arg2, %c0_i32, %c0_i32_0 : i32, i32, i32
  }
  func.func @transform_1(%arg0: i32, %arg1: i32, %arg2: i32) -> (i32, i32, i32, i32) {
    %c0_i32 = arith.constant 0 : i32
    %c0_i32_0 = arith.constant 0 : i32
    return %arg0, %arg2, %arg1, %c0_i32 : i32, i32, i32, i32
  }
  func.func @transform_2(%arg0: i32, %arg1: i32, %arg2: i32) -> (i32, i32, i32) {
    %c0_i32 = arith.constant 0 : i32
    %c0_i32_0 = arith.constant 0 : i32
    return %arg0, %arg1, %c0_i32 : i32, i32, i32
  }
}

module attributes {stable_mosaic.version = 11 : i64} {
  func.func @_linear_kernel(%arg0: i32, %arg1: memref<16x128xbf16, #tpu.memory_space<vmem>>, %arg2: memref<128x128xbf16, #tpu.memory_space<vmem>>, %arg3: memref<1x128xf32, #tpu.memory_space<vmem>>, %arg4: memref<16x128xbf16, #tpu.memory_space<vmem>>) attributes {dimension_semantics = [#tpu.dimension_semantics<parallel>], iteration_bounds = array<i64: 1>, scalar_prefetch = 0 : i64, scratch_operands = 0 : i64, tpu.core_type = #tpu.core_type<tc>, window_params = [{transform_indices = @transform_0, window_bounds = array<i64: 16, 128>}, {pipeline_mode = #tpu.pipeline_mode<synchronous>, transform_indices = @transform_1, window_bounds = array<i64: 128, 128>}, {pipeline_mode = #tpu.pipeline_mode<synchronous>, transform_indices = @transform_2, window_bounds = array<i64: 1, 128>}, {transform_indices = @transform_3, window_bounds = array<i64: 16, 128>}]} {
    %c0 = arith.constant 0 : index
    %c0_0 = arith.constant 0 : index
    %0 = vector.load %arg1[%c0, %c0_0] : memref<16x128xbf16, #tpu.memory_space<vmem>>, vector<16x128xbf16>
    %c0_1 = arith.constant 0 : index
    %c0_2 = arith.constant 0 : index
    %1 = vector.load %arg2[%c0_1, %c0_2] : memref<128x128xbf16, #tpu.memory_space<vmem>>, vector<128x128xbf16>
    %cst = arith.constant dense<0.000000e+00> : vector<16x128xf32>
    %2 = tpu.matmul %0, %1, %cst {dimension_numbers = #tpu.dot_dimension_numbers<[1], [0], [0], [1], [0, 0, 1, 1], [], []>} : vector<16x128xbf16>, vector<128x128xbf16>, vector<16x128xf32> -> vector<16x128xf32>
    %c0_3 = arith.constant 0 : index
    %c0_4 = arith.constant 0 : index
    %3 = vector.load %arg3[%c0_3, %c0_4] : memref<1x128xf32, #tpu.memory_space<vmem>>, vector<1x128xf32>
    %4 = vector.broadcast %3 : vector<1x128xf32> to vector<16x128xf32>
    %5 = arith.addf %2, %4 : vector<16x128xf32>
    %6 = arith.truncf %5 : vector<16x128xf32> to vector<16x128xbf16>
    %c0_5 = arith.constant 0 : index
    %c0_6 = arith.constant 0 : index
    %7 = vector.load %arg4[%c0_5, %c0_6] : memref<16x128xbf16, #tpu.memory_space<vmem>>, vector<16x128xbf16>
    tpu.vector_store %arg4[%c0_5, %c0_6], %6 {strides = array<i32>} : memref<16x128xbf16, #tpu.memory_space<vmem>>, vector<16x128xbf16>,
    return
  }
  func.func @transform_0(%arg0: i32) -> (i32, i32) {
    %c0_i32 = arith.constant 0 : i32
    %c0_i32_0 = arith.constant 0 : i32
    return %arg0, %c0_i32 : i32, i32
  }
  func.func @transform_1(%arg0: i32) -> (i32, i32) {
    %c0_i32 = arith.constant 0 : i32
    %c0_i32_0 = arith.constant 0 : i32
    %c0_i32_1 = arith.constant 0 : i32
    return %c0_i32, %c0_i32_0 : i32, i32
  }
  func.func @transform_2(%arg0: i32) -> (i32, i32) {
    %c0_i32 = arith.constant 0 : i32
    %c0_i32_0 = arith.constant 0 : i32
    %c0_i32_1 = arith.constant 0 : i32
    return %c0_i32, %c0_i32_0 : i32, i32
  }
  func.func @transform_3(%arg0: i32) -> (i32, i32) {
    %c0_i32 = arith.constant 0 : i32
    %c0_i32_0 = arith.constant 0 : i32
    return %arg0, %c0_i32 : i32, i32
  }
}

module attributes {stable_mosaic.version = 11 : i64} {
  func.func @_mha_kernel(%arg0: i32, %arg1: i32, %arg2: memref<1x8x8x16xbf16, #tpu.memory_space<vmem>>, %arg3: memref<1x8x8x16xbf16, #tpu.memory_space<vmem>>, %arg4: memref<1x8x8x16xbf16, #tpu.memory_space<vmem>>, %arg5: memref<1x8x8x16xbf16, #tpu.memory_space<vmem>>) attributes {dimension_semantics = [#tpu.dimension_semantics<parallel>, #tpu.dimension_semantics<parallel>], iteration_bounds = array<i64: 2, 1>, scalar_prefetch = 0 : i64, scratch_operands = 0 : i64, tpu.core_type = #tpu.core_type<tc>, window_params = [{transform_indices = @transform_0, window_bounds = array<i64: 1, 8, 8, 16>}, {transform_indices = @transform_1, window_bounds = array<i64: 1, 8, 8, 16>}, {transform_indices = @transform_2, window_bounds = array<i64: 1, 8, 8, 16>}, {transform_indices = @transform_3, window_bounds = array<i64: 1, 8, 8, 16>}]} {
    %c0 = arith.constant 0 : index
    %c0_0 = arith.constant 0 : index
    %c0_1 = arith.constant 0 : index
    %c0_2 = arith.constant 0 : index
    %0 = vector.load %arg2[%c0, %c0_0, %c0_1, %c0_2] : memref<1x8x8x16xbf16, #tpu.memory_space<vmem>>, vector<1x8x8x16xbf16>
    %1 = vector.shape_cast %0 : vector<1x8x8x16xbf16> to vector<8x8x16xbf16>
    %c0_3 = arith.constant 0 : index
    %c0_4 = arith.constant 0 : index
    %c0_5 = arith.constant 0 : index
    %c0_6 = arith.constant 0 : index
    %2 = vector.load %arg3[%c0_3, %c0_4, %c0_5, %c0_6] : memref<1x8x8x16xbf16, #tpu.memory_space<vmem>>, vector<1x8x8x16xbf16>
    %3 = vector.shape_cast %2 : vector<1x8x8x16xbf16> to vector<8x8x16xbf16>
    %c0_7 = arith.constant 0 : index
    %c0_8 = arith.constant 0 : index
    %c0_9 = arith.constant 0 : index
    %c0_10 = arith.constant 0 : index
    %4 = vector.load %arg4[%c0_7, %c0_8, %c0_9, %c0_10] : memref<1x8x8x16xbf16, #tpu.memory_space<vmem>>, vector<1x8x8x16xbf16>
    %5 = vector.shape_cast %4 : vector<1x8x8x16xbf16> to vector<8x8x16xbf16>
    "tpu.trace_start"() <{level = 10 : i32, message = "hqd,hkd->hqk"}> : () -> ()
    %cst = arith.constant dense<0.000000e+00> : vector<8x8x8xf32>
    %6 = tpu.matmul %1, %3, %cst {dimension_numbers = #tpu.dot_dimension_numbers<[2], [2], [1], [1], [0, 0, 0, 1, 1, 1], [0], [0]>} : vector<8x8x16xbf16>, vector<8x8x16xbf16>, vector<8x8x8xf32> -> vector<8x8x8xf32>
    "tpu.trace_stop"() : () -> ()
    %cst_11 = arith.constant 2.500000e-01 : f32
    %7 = vector.broadcast %cst_11 : f32 to vector<8x8x8xf32>
    %8 = arith.mulf %6, %7 : vector<8x8x8xf32>
    %cst_12 = arith.constant dense<0xFF800000> : vector<8x8xf32>
    %9 = vector.multi_reduction <maximumf>, %8, %cst_12 [2] : vector<8x8x8xf32> to vector<8x8xf32>
    %10 = vector.shape_cast %9 : vector<8x8xf32> to vector<8x8x1xf32>
    %11 = vector.broadcast %10 : vector<8x8x1xf32> to vector<8x8x8xf32>
    %12 = arith.subf %8, %11 : vector<8x8x8xf32>
    %13 = math.exp %12 : vector<8x8x8xf32>
    %cst_13 = arith.constant dense<0.000000e+00> : vector<8x8xf32>
    %14 = vector.multi_reduction <add>, %13, %cst_13 [2] : vector<8x8x8xf32> to vector<8x8xf32>
    %15 = vector.shape_cast %14 : vector<8x8xf32> to vector<8x8x1xf32>
    %16 = tpu.reciprocal %15 {approx = true} : vector<8x8x1xf32> -> vector<8x8x1xf32>
    %17 = vector.broadcast %16 : vector<8x8x1xf32> to vector<8x8x8xf32>
    %18 = arith.mulf %13, %17 : vector<8x8x8xf32>
    %19 = arith.truncf %18 : vector<8x8x8xf32> to vector<8x8x8xbf16>
    "tpu.trace_start"() <{level = 10 : i32, message = "hqk,hkd->hqd"}> : () -> ()
    %cst_14 = arith.constant dense<0.000000e+00> : vector<8x8x16xf32>
    %20 = tpu.matmul %19, %5, %cst_14 {dimension_numbers = #tpu.dot_dimension_numbers<[2], [1], [1], [2], [0, 0, 0, 1, 1, 2], [0], [0]>} : vector<8x8x8xbf16>, vector<8x8x16xbf16>, vector<8x8x16xf32> -> vector<8x8x16xf32>
    "tpu.trace_stop"() : () -> ()
    %21 = arith.truncf %20 : vector<8x8x16xf32> to vector<8x8x16xbf16>
    %c0_15 = arith.constant 0 : index
    %c0_16 = arith.constant 0 : index
    %c0_17 = arith.constant 0 : index
    %c0_18 = arith.constant 0 : index
    %22 = vector.load %arg5[%c0_15, %c0_16, %c0_17, %c0_18] : memref<1x8x8x16xbf16, #tpu.memory_space<vmem>>, vector<1x8x8x16xbf16>
    %23 = vector.shape_cast %22 : vector<1x8x8x16xbf16> to vector<8x8x16xbf16>
    %24 = vector.shape_cast %21 : vector<8x8x16xbf16> to vector<1x8x8x16xbf16>
    tpu.vector_store %arg5[%c0_15, %c0_16, %c0_17, %c0_18], %24 {strides = array<i32>} : memref<1x8x8x16xbf16, #tpu.memory_space<vmem>>, vector<1x8x8x16xbf16>,
    return
  }
  func.func @transform_0(%arg0: i32, %arg1: i32) -> (i32, i32, i32, i32) {
    %c0_i32 = arith.constant 0 : i32
    %c0_i32_0 = arith.constant 0 : i32
    %c0_i32_1 = arith.constant 0 : i32
    return %arg0, %c0_i32, %arg1, %c0_i32_0 : i32, i32, i32, i32
  }
  func.func @transform_1(%arg0: i32, %arg1: i32) -> (i32, i32, i32, i32) {
    %c0_i32 = arith.constant 0 : i32
    %c0_i32_0 = arith.constant 0 : i32
    %c0_i32_1 = arith.constant 0 : i32
    %c0_i32_2 = arith.constant 0 : i32
    return %arg0, %c0_i32, %c0_i32_0, %c0_i32_1 : i32, i32, i32, i32
  }
  func.func @transform_2(%arg0: i32, %arg1: i32) -> (i32, i32, i32, i32) {
    %c0_i32 = arith.constant 0 : i32
    %c0_i32_0 = arith.constant 0 : i32
    %c0_i32_1 = arith.constant 0 : i32
    %c0_i32_2 = arith.constant 0 : i32
    return %arg0, %c0_i32, %c0_i32_0, %c0_i32_1 : i32, i32, i32, i32
  }
  func.func @transform_3(%arg0: i32, %arg1: i32) -> (i32, i32, i32, i32) {
    %c0_i32 = arith.constant 0 : i32
    %c0_i32_0 = arith.constant 0 : i32
    %c0_i32_1 = arith.constant 0 : i32
    return %arg0, %c0_i32, %arg1, %c0_i32_0 : i32, i32, i32, i32
  }
}

module attributes {stable_mosaic.version = 11 : i64} {
  func.func @_linear_kernel(%arg0: i32, %arg1: memref<16x128xbf16, #tpu.memory_space<vmem>>, %arg2: memref<128x128xbf16, #tpu.memory_space<vmem>>, %arg3: memref<1x128xf32, #tpu.memory_space<vmem>>, %arg4: memref<16x128xf32, #tpu.memory_space<vmem>>) attributes {dimension_semantics = [#tpu.dimension_semantics<parallel>], iteration_bounds = array<i64: 1>, scalar_prefetch = 0 : i64, scratch_operands = 0 : i64, tpu.core_type = #tpu.core_type<tc>, window_params = [{transform_indices = @transform_0, window_bounds = array<i64: 16, 128>}, {pipeline_mode = #tpu.pipeline_mode<synchronous>, transform_indices = @transform_1, window_bounds = array<i64: 128, 128>}, {pipeline_mode = #tpu.pipeline_mode<synchronous>, transform_indices = @transform_2, window_bounds = array<i64: 1, 128>}, {transform_indices = @transform_3, window_bounds = array<i64: 16, 128>}]} {
    %c0 = arith.constant 0 : index
    %c0_0 = arith.constant 0 : index
    %0 = vector.load %arg1[%c0, %c0_0] : memref<16x128xbf16, #tpu.memory_space<vmem>>, vector<16x128xbf16>
    %c0_1 = arith.constant 0 : index
    %c0_2 = arith.constant 0 : index
    %1 = vector.load %arg2[%c0_1, %c0_2] : memref<128x128xbf16, #tpu.memory_space<vmem>>, vector<128x128xbf16>
    %cst = arith.constant dense<0.000000e+00> : vector<16x128xf32>
    %2 = tpu.matmul %0, %1, %cst {dimension_numbers = #tpu.dot_dimension_numbers<[1], [0], [0], [1], [0, 0, 1, 1], [], []>} : vector<16x128xbf16>, vector<128x128xbf16>, vector<16x128xf32> -> vector<16x128xf32>
    %c0_3 = arith.constant 0 : index
    %c0_4 = arith.constant 0 : index
    %3 = vector.load %arg3[%c0_3, %c0_4] : memref<1x128xf32, #tpu.memory_space<vmem>>, vector<1x128xf32>
    %4 = vector.broadcast %3 : vector<1x128xf32> to vector<16x128xf32>
    %5 = arith.addf %2, %4 : vector<16x128xf32>
    %c0_5 = arith.constant 0 : index
    %c0_6 = arith.constant 0 : index
    %6 = vector.load %arg4[%c0_5, %c0_6] : memref<16x128xf32, #tpu.memory_space<vmem>>, vector<16x128xf32>
    tpu.vector_store %arg4[%c0_5, %c0_6], %5 {strides = array<i32>} : memref<16x128xf32, #tpu.memory_space<vmem>>, vector<16x128xf32>,
    return
  }
  func.func @transform_0(%arg0: i32) -> (i32, i32) {
    %c0_i32 = arith.constant 0 : i32
    %c0_i32_0 = arith.constant 0 : i32
    return %arg0, %c0_i32 : i32, i32
  }
  func.func @transform_1(%arg0: i32) -> (i32, i32) {
    %c0_i32 = arith.constant 0 : i32
    %c0_i32_0 = arith.constant 0 : i32
    %c0_i32_1 = arith.constant 0 : i32
    return %c0_i32, %c0_i32_0 : i32, i32
  }
  func.func @transform_2(%arg0: i32) -> (i32, i32) {
    %c0_i32 = arith.constant 0 : i32
    %c0_i32_0 = arith.constant 0 : i32
    %c0_i32_1 = arith.constant 0 : i32
    return %c0_i32, %c0_i32_0 : i32, i32
  }
  func.func @transform_3(%arg0: i32) -> (i32, i32) {
    %c0_i32 = arith.constant 0 : i32
    %c0_i32_0 = arith.constant 0 : i32
    return %arg0, %c0_i32 : i32, i32
  }
}

module attributes {stable_mosaic.version = 11 : i64} {
  func.func @_attn_post_kernel(%arg0: i32, %arg1: memref<16x128xbf16, #tpu.memory_space<vmem>>, %arg2: memref<128x128xbf16, #tpu.memory_space<vmem>>, %arg3: memref<1x128xf32, #tpu.memory_space<vmem>>, %arg4: memref<128x128xbf16, #tpu.memory_space<vmem>>, %arg5: memref<1x128xf32, #tpu.memory_space<vmem>>, %arg6: memref<1x128xf32, #tpu.memory_space<vmem>>, %arg7: memref<1x128xf32, #tpu.memory_space<vmem>>, %arg8: memref<16x128xbf16, #tpu.memory_space<vmem>>) attributes {dimension_semantics = [#tpu.dimension_semantics<parallel>], iteration_bounds = array<i64: 1>, scalar_prefetch = 0 : i64, scratch_operands = 0 : i64, tpu.core_type = #tpu.core_type<tc>, window_params = [{transform_indices = @transform_0, window_bounds = array<i64: 16, 128>}, {pipeline_mode = #tpu.pipeline_mode<synchronous>, transform_indices = @transform_1, window_bounds = array<i64: 128, 128>}, {pipeline_mode = #tpu.pipeline_mode<synchronous>, transform_indices = @transform_2, window_bounds = array<i64: 1, 128>}, {pipeline_mode = #tpu.pipeline_mode<synchronous>, transform_indices = @transform_3, window_bounds = array<i64: 128, 128>}, {pipeline_mode = #tpu.pipeline_mode<synchronous>, transform_indices = @transform_4, window_bounds = array<i64: 1, 128>}, {pipeline_mode = #tpu.pipeline_mode<synchronous>, transform_indices = @transform_5, window_bounds = array<i64: 1, 128>}, {pipeline_mode = #tpu.pipeline_mode<synchronous>, transform_indices = @transform_6, window_bounds = array<i64: 1, 128>}, {transform_indices = @transform_7, window_bounds = array<i64: 16, 128>}]} {
    %c0 = arith.constant 0 : index
    %c0_0 = arith.constant 0 : index
    %0 = vector.load %arg1[%c0, %c0_0] : memref<16x128xbf16, #tpu.memory_space<vmem>>, vector<16x128xbf16>
    %c0_1 = arith.constant 0 : index
    %c0_2 = arith.constant 0 : index
    %1 = vector.load %arg2[%c0_1, %c0_2] : memref<128x128xbf16, #tpu.memory_space<vmem>>, vector<128x128xbf16>
    %cst = arith.constant dense<0.000000e+00> : vector<16x128xf32>
    %2 = tpu.matmul %0, %1, %cst {dimension_numbers = #tpu.dot_dimension_numbers<[1], [0], [0], [1], [0, 0, 1, 1], [], []>} : vector<16x128xbf16>, vector<128x128xbf16>, vector<16x128xf32> -> vector<16x128xf32>
    %c0_3 = arith.constant 0 : index
    %c0_4 = arith.constant 0 : index
    %3 = vector.load %arg3[%c0_3, %c0_4] : memref<1x128xf32, #tpu.memory_space<vmem>>, vector<1x128xf32>
    %4 = vector.broadcast %3 : vector<1x128xf32> to vector<16x128xf32>
    %5 = arith.addf %2, %4 : vector<16x128xf32>
    %6 = arith.truncf %5 : vector<16x128xf32> to vector<16x128xbf16>
    %c0_5 = arith.constant 0 : index
    %c0_6 = arith.constant 0 : index
    %7 = vector.load %arg4[%c0_5, %c0_6] : memref<128x128xbf16, #tpu.memory_space<vmem>>, vector<128x128xbf16>
    %cst_7 = arith.constant dense<0.000000e+00> : vector<16x128xf32>
    %8 = tpu.matmul %6, %7, %cst_7 {dimension_numbers = #tpu.dot_dimension_numbers<[1], [0], [0], [1], [0, 0, 1, 1], [], []>} : vector<16x128xbf16>, vector<128x128xbf16>, vector<16x128xf32> -> vector<16x128xf32>
    %c0_8 = arith.constant 0 : index
    %c0_9 = arith.constant 0 : index
    %9 = vector.load %arg5[%c0_8, %c0_9] : memref<1x128xf32, #tpu.memory_space<vmem>>, vector<1x128xf32>
    %10 = vector.broadcast %9 : vector<1x128xf32> to vector<16x128xf32>
    %11 = arith.addf %8, %10 : vector<16x128xf32>
    %cst_10 = arith.constant dense<0.000000e+00> : vector<16xf32>
    %12 = vector.multi_reduction <add>, %11, %cst_10 [1] : vector<16x128xf32> to vector<16xf32>
    %13 = vector.shape_cast %12 : vector<16xf32> to vector<16x1xf32>
    %cst_11 = arith.constant 1.280000e+02 : f32
    %14 = vector.broadcast %cst_11 : f32 to vector<16x1xf32>
    %15 = arith.divf %13, %14 : vector<16x1xf32>
    %16 = vector.broadcast %15 : vector<16x1xf32> to vector<16x128xf32>
    %17 = arith.subf %11, %16 : vector<16x128xf32>
    %18 = arith.mulf %17, %17 : vector<16x128xf32>
    %cst_12 = arith.constant dense<0.000000e+00> : vector<16xf32>
    %19 = vector.multi_reduction <add>, %18, %cst_12 [1] : vector<16x128xf32> to vector<16xf32>
    %20 = vector.shape_cast %19 : vector<16xf32> to vector<16x1xf32>
    %cst_13 = arith.constant 1.280000e+02 : f32
    %21 = vector.broadcast %cst_13 : f32 to vector<16x1xf32>
    %22 = arith.divf %20, %21 : vector<16x1xf32>
    %23 = vector.broadcast %15 : vector<16x1xf32> to vector<16x128xf32>
    %24 = arith.subf %11, %23 : vector<16x128xf32>
    %cst_14 = arith.constant 9.99999974E-6 : f32
    %25 = vector.broadcast %cst_14 : f32 to vector<16x1xf32>
    %26 = arith.addf %22, %25 : vector<16x1xf32>
    %27 = math.rsqrt %26 : vector<16x1xf32>
    %28 = vector.broadcast %27 : vector<16x1xf32> to vector<16x128xf32>
    %29 = arith.mulf %24, %28 : vector<16x128xf32>
    %c0_15 = arith.constant 0 : index
    %c0_16 = arith.constant 0 : index
    %30 = vector.load %arg6[%c0_15, %c0_16] : memref<1x128xf32, #tpu.memory_space<vmem>>, vector<1x128xf32>
    %31 = vector.broadcast %30 : vector<1x128xf32> to vector<16x128xf32>
    %32 = arith.mulf %29, %31 : vector<16x128xf32>
    %c0_17 = arith.constant 0 : index
    %c0_18 = arith.constant 0 : index
    %33 = vector.load %arg7[%c0_17, %c0_18] : memref<1x128xf32, #tpu.memory_space<vmem>>, vector<1x128xf32>
    %34 = vector.broadcast %33 : vector<1x128xf32> to vector<16x128xf32>
    %35 = arith.addf %32, %34 : vector<16x128xf32>
    %36 = arith.truncf %35 : vector<16x128xf32> to vector<16x128xbf16>
    %c0_19 = arith.constant 0 : index
    %c0_20 = arith.constant 0 : index
    %37 = vector.load %arg8[%c0_19, %c0_20] : memref<16x128xbf16, #tpu.memory_space<vmem>>, vector<16x128xbf16>
    tpu.vector_store %arg8[%c0_19, %c0_20], %36 {strides = array<i32>} : memref<16x128xbf16, #tpu.memory_space<vmem>>, vector<16x128xbf16>,
    return
  }
  func.func @transform_0(%arg0: i32) -> (i32, i32) {
    %c0_i32 = arith.constant 0 : i32
    %c0_i32_0 = arith.constant 0 : i32
    return %arg0, %c0_i32 : i32, i32
  }
  func.func @transform_1(%arg0: i32) -> (i32, i32) {
    %c0_i32 = arith.constant 0 : i32
    %c0_i32_0 = arith.constant 0 : i32
    %c0_i32_1 = arith.constant 0 : i32
    return %c0_i32, %c0_i32_0 : i32, i32
  }
  func.func @transform_2(%arg0: i32) -> (i32, i32) {
    %c0_i32 = arith.constant 0 : i32
    %c0_i32_0 = arith.constant 0 : i32
    %c0_i32_1 = arith.constant 0 : i32
    return %c0_i32, %c0_i32_0 : i32, i32
  }
  func.func @transform_3(%arg0: i32) -> (i32, i32) {
    %c0_i32 = arith.constant 0 : i32
    %c0_i32_0 = arith.constant 0 : i32
    %c0_i32_1 = arith.constant 0 : i32
    return %c0_i32, %c0_i32_0 : i32, i32
  }
  func.func @transform_4(%arg0: i32) -> (i32, i32) {
    %c0_i32 = arith.constant 0 : i32
    %c0_i32_0 = arith.constant 0 : i32
    %c0_i32_1 = arith.constant 0 : i32
    return %c0_i32, %c0_i32_0 : i32, i32
  }
  func.func @transform_5(%arg0: i32) -> (i32, i32) {
    %c0_i32 = arith.constant 0 : i32
    %c0_i32_0 = arith.constant 0 : i32
    %c0_i32_1 = arith.constant 0 : i32
    return %c0_i32, %c0_i32_0 : i32, i32
  }
  func.func @transform_6(%arg0: i32) -> (i32, i32) {
    %c0_i32 = arith.constant 0 : i32
    %c0_i32_0 = arith.constant 0 : i32
    %c0_i32_1 = arith.constant 0 : i32
    return %c0_i32, %c0_i32_0 : i32, i32
  }
  func.func @transform_7(%arg0: i32) -> (i32, i32) {
    %c0_i32 = arith.constant 0 : i32
    %c0_i32_0 = arith.constant 0 : i32
    return %arg0, %c0_i32 : i32, i32
  }
}

</mosaic_0001>

<bundles_post_ra>
// kernel: latent_predictor_forward.7
= control target key start
LH: loop header
LB: loop body
LE: loop exit
PB: predicated region body
PF: predicated region fallthrough
CT: control target
= control target key end

     0   :  { %s491_s9 = smov 0   ;;  %s493_s10 = smov 0   ;;  %s555_s0 = inlined_call_operand.vmem [shape: f32[25,1,128], index: 0, kind: input, shape index: {}]   ;;  %s556_s1 = inlined_call_operand.vmem [shape: f32[2,25,16,64], index: 1, kind: input, shape index: {}]   ;;  %s557_s2 = inlined_call_operand.vmem [shape: bf16[2,16,64], index: 2, kind: output, shape index: {}]  }
   0x1   :  { %s495_s11 = smov 0   ;;  %s497_s12 = smov 0  }
   0x2   :  { %s499_s13 = smov 0  }
   0x3 LB: > { %s24_s14 = sadd.s32 1, %s464_s11  ;;  %s31_s15 = sadd.s32 1, %s468_s12  ;;  %s472_s13 = sphi %s499_s13, %s12_s13   ;;  %s468_s12 = sphi %s497_s12, %s561_s12   ;;  %s464_s11 = sphi %s495_s11, %s560_s11   ;;  %s460_s10 = sphi %s493_s10, %s559_s10   ;;  %s456_s9 = sphi %s491_s9, %s558_s9  }
   0x4   : > { %p25_p0 = scmp.ge.s32.totalorder %s24_s14, 25  ;;  %p375_p1 = scmp.ge.s32.totalorder %s472_s13, 1 }
   0x5   : > { %p154_p2 = scmp.lt.s32.totalorder %s472_s13, 51 }
   0x6   : > { %s563_s14 = smov (%p25_p0, %s24_s14), 0  ;;  %s565_s15 = smov (!%p25_p0, %s31_s15), %s468_s12 }
   0x7   : > { %p155_p3 = pnand %p375_p1, %p154_p2  ;;  %p33_p4 = scmp.ge.s32.totalorder %s565_s15, 2 }
   0x8   : > { %p191_p5 = scmp.lt.s32.totalorder (!%p155_p3), %s456_s9, 24  ;;  %p195_p6 = scmp.lt.s32.totalorder (!%p155_p3), %s460_s10, 1 }
   0x9   : > { %s567_s15 = smov (%p33_p4, %s565_s15), 0  ;;  %158 = sbr.rel (%p155_p3) target bundleno = 169 (0xa9), region = 28 }
   0xa   : > { %p380_p7 = scmp.ne.s32.totalorder (!%p155_p3), %s456_s9, 0 }
  0x10   : > { %s192_s16 = scalar_select %p191_p5, %s456_s9, 24 }
  0x11   : > { %s569_s10 = smov (!%p195_p6, %s460_s10), 1  ;;  %221 = sbr.rel (%p380_p7) target bundleno = 24 (0x18), region = 32 }
  0x12   : > { %s193_s19 = scalar_lea.vmem %s555_s0, %s192_s16  ;;  %s376_s20 = sshll.u32 %s192_s16, 1  ;;  %vm222_vm0 = vcmask (!%p380_p7), 523264   ;;  %v474_v0 = vmov (!%p380_p7), 0.0  }
  0x13   : > { %s390_s21 = smul.u32 50, %s569_s10  ;;  %s387_s22 = sshll.u32 %s569_s10, 3  ;;  %223 = vst.msk [vmem:[#allocation2] sm:$0xff] (!%p380_p7), %vm222_vm0, %v474_v0  ;;  %224 = vst.msk [vmem:[#allocation2 + $0x8] sm:$0xff] (!%p380_p7), %vm222_vm0, %v474_v0 }
  0x14   : > { %s531_s25 = scalar_lea.vmem %s557_s2, %s387_s22 }
  0x15   : > { %s204_s26 = sadd.s32 %s390_s21, %s376_s20 }
  0x16   : > { %s377_s27 = sshll.u32 %s204_s26, 3 }
  0x17   : > { %s206_s30 = scalar_lea.vmem %s556_s1, %s377_s27 }
  0x18 PF: > { %v381_v1 = vld [vmem:[%s193_s19] ss:$0 sm:$0xff]  ;;  %v475_v2 = vmov 0   ;;  %v229_v4 = vld [vmem:[%s206_s30 + $0x8] sm:$0xff]  ;;  %vm243_vm1 = vcmask 523264   ;;  %p382_p8 = scmp.ne.s32.totalorder %s456_s9, 24 }
  0x19   : > { %433 = vset.pattern.permute.xlu0 %v475_v2  ;;  %v228_v3 = vld [vmem:[%s206_s30] sm:$0xff]  ;;  %vm260_vm2 = vcmask (!%p382_p8), 519168  }
  0x1a   : > { %236 = vperm.xlu0 %433, %v381_v1   ;;  %v226_v5 = vld [vmem:[#allocation2] sm:$0xff]  ;;  %v227_v6 = vld [vmem:[#allocation2 + $0x8] sm:$0xff] }
  0x98   : > { %249 = sbr.rel (%p382_p8) target bundleno = 169 (0xa9), region = 36 }
  0x99   : > { %v237_v7 = vpop.permute.xlu0 %236 }
  0x9a   : > { %v239_v8 = vmul.f32 %v237_v7, %v228_v3  ;;  %v240_v9 = vmul.f32 %v237_v7, %v229_v4 }
  0x9c   : > { %v241_v10 = vadd.f32 %v239_v8, %v226_v5  ;;  %v242_v11 = vadd.f32 %v240_v9, %v227_v6 }
  0x9e   : > { %244 = vst.msk [vmem:[#allocation2] sm:$0xff] %vm243_vm1, %v241_v10  ;;  %245 = vst.msk [vmem:[#allocation2 + $0x8] sm:$0xff] %vm243_vm1, %v242_v11 }
  0xa5   : > { %v250_v12 = vld [vmem:[#allocation2] sm:$0xff]  ;;  %v251_v13 = vld [vmem:[#allocation2 + $0x8] sm:$0xff] }
  0xa6   : > { %v388_v14 = vpack.c.bf16 %v250_v12, %v250_v12  ;;  %v389_v15 = vpack.c.bf16 %v251_v13, %v251_v13 }
  0xa8   : > { %261 = vst.msk [vmem:[%s531_s25] sm:$0xf] %vm260_vm2, %v388_v14  ;;  %262 = vst.msk [vmem:[%s531_s25 + $0x4] sm:$0xf] %vm260_vm2, %v389_v15 }
  0xa9 PF: > { %s12_s13 = sadd.s32 1, %s472_s13   ;;  %s558_s9 = smov %s464_s11 }
  0xaa   : > { %p9_p9 = scmp.ge.s32.totalorder %s12_s13, 52   ;;  %s559_s10 = smov %s468_s12 }
  0xab   : > { %s560_s11 = smov %s563_s14  ;;  %s561_s12 = smov %s567_s15 }
  0xac   :  { %11 = sbr.rel (!%p9_p9) target bundleno = 3 (0x3), region = 69 }

// kernel: latent_predictor_forward.8
= control target key start
LH: loop header
LB: loop body
LE: loop exit
PB: predicated region body
PF: predicated region fallthrough
CT: control target
= control target key end

     0   :  { %s584_s15 = smov 0   ;;  %s644_s0 = inlined_call_operand.vmem [shape: bf16[2,9,128], index: 0, kind: input, shape index: {}]   ;;  %s645_s1 = inlined_call_operand.vmem [shape: bf16[128,128], index: 1, kind: input, shape index: {}]   ;;  %s646_s2 = inlined_call_operand.vmem [shape: bf16[64,128], index: 2, kind: input, shape index: {}]   ;;  %s647_s3 = inlined_call_operand.vmem [shape: f32[1,128], index: 3, kind: input, shape index: {}]   ;;  %s648_s4 = inlined_call_operand.vmem [shape: bf16[2,8,128], index: 4, kind: output, shape index: {}]  }
   0x1 LB: > { %s454_s16 = sadd.s32 4294967295, %s555_s15   ;;  %p458_p0 = scmp.ge.s32.totalorder %s555_s15, 1  ;;  %s555_s15 = sphi %s584_s15, %s14_s15  }
   0x2   : > { %p162_p1 = scmp.lt.s32.totalorder %s555_s15, 3 }
   0x4   : > { %p163_p2 = pnand %p458_p0, %p162_p1 }
   0x5   : > { %v536_v0 = vld [vmem:[%s645_s1] sm:$0xff] (!%p163_p2)   ;;  %v557_v1 = vmov (!%p163_p2), 0.0   ;;  %v537_v2 = vld [vmem:[%s645_s1 + $0x8] sm:$0xff] (!%p163_p2)   ;;  %vm558_vm0 = vmmov (!%p163_p2), 0   ;;  %p187_p3 = scmp.lt.s32.totalorder (!%p163_p2), %s454_s16, 1  ;;  %v538_v4 = vld [vmem:[%s645_s1 + $0x10] sm:$0xff] (!%p163_p2)  }
   0x6   : > { %166 = sbr.rel (%p163_p2) target bundleno = 257 (0x101), region = 36  ;;  %506 = vmatprep.subr.bf16.mxu1 (!%p163_p2), %v557_v1  ;;  %494 = vmatprep.subr.bf16.mxu0 (!%p163_p2), %v557_v1  ;;  %v540_v3 = vld [vmem:[%s646_s2] sm:$0xff] (!%p163_p2)   ;;  %v542_v5 = vld [vmem:[%s646_s2 + $0x8] sm:$0xff] (!%p163_p2)   ;;  %v539_v6 = vld [vmem:[%s645_s1 + $0x18] sm:$0xff] (!%p163_p2)   ;;  %vm259_vm1 = vcmask (!%p163_p2), 523264  }
   0x7   : > { %507 = vmatpush3.bf16.msra.mxu1 (!%p163_p2), %v536_v0  ;;  %502 = vmatprep.mubr.msk.bf16.mxu0 (!%p163_p2), %vm558_vm0, %v557_v1  ;;  %v544_v7 = vld [vmem:[%s646_s2 + $0x10] sm:$0xff] (!%p163_p2)   ;;  %v541_v11 = vld [vmem:[%s645_s1 + $0x20] sm:$0xff] (!%p163_p2)   ;;  %v546_v12 = vld [vmem:[%s646_s2 + $0x18] sm:$0xff] (!%p163_p2)  }
   0x8   : > { %508 = vmatprep.subr.bf16.mxu1 (!%p163_p2), %v557_v1  ;;  %522 = vmatprep.mubr.msk.bf16.mxu1 (!%p163_p2), %vm558_vm0, %v557_v1  ;;  %v543_v16 = vld [vmem:[%s645_s1 + $0x28] sm:$0xff] (!%p163_p2)   ;;  %v545_v18 = vld [vmem:[%s645_s1 + $0x30] sm:$0xff] (!%p163_p2)   ;;  %v548_v19 = vld [vmem:[%s645_s1 + $0x38] sm:$0xff] (!%p163_p2)  }
   0x9   : > { %495 = vmatpush3.bf16.msra.mxu0 (!%p163_p2), %v540_v3  ;;  %v476_v25 = vld [vmem:[%s647_s3] ss:$0 sm:$0xff] (!%p163_p2) }
   0xa   : > { %496 = vmatprep.subr.bf16.mxu0 (!%p163_p2), %v557_v1 }
   0xb   : > { %509 = vmatpush3.bf16.msra.mxu1 (!%p163_p2), %v537_v2 }
   0xc   : > { %510 = vmatprep.subr.bf16.mxu1 (!%p163_p2), %v557_v1 }
   0xd   : > { %s650_s16 = smov (!%p187_p3, %s454_s16), 1  ;;  %497 = vmatpush3.bf16.msra.mxu0 %v542_v5 }
   0xe   : > { %s479_s27 = sshll.u32 %s650_s16, 3  ;;  %498 = vmatprep.subr.bf16.mxu0 %v557_v1  ;;  %s461_s23 = sshll.u32 %s650_s16, 2 }
   0xf   : > { %s191_s30 = scalar_lea.vmem %s644_s0, %s479_s27  ;;  %511 = vmatpush3.bf16.msra.mxu1 %v538_v4  ;;  %s195_s26 = scalar_lea.vmem %s648_s4, %s461_s23 }
  0x10   : > { %512 = vmatprep.subr.bf16.mxu1 %v557_v1  ;;  %v197_v8 = vld [vmem:[%s191_s30] sm:$0xf]  ;;  %v198_v9 = vld [vmem:[%s191_s30 + $0x4] sm:$0x1] }
  0x11   : > { %v462_v10 = vcombine.low %v197_v8, %v198_v9  ;;  %499 = vmatpush3.bf16.msra.mxu0 %v544_v7 }
  0x12   : > { %500 = vmatprep.subr.bf16.mxu0 %v557_v1 }
  0x13   : > { %513 = vmatpush3.bf16.msra.mxu1 %v539_v6  ;;  %v229_v13 = vshrl.u32 %v462_v10, 16  ;;  %v231_v14 = vshll.u32 %v462_v10, 16 }
  0x14   : > { %514 = vmatprep.subr.bf16.mxu1 %v557_v1 }
  0x15   : > { %v233_v15 = vrot.slane %v231_v14, 1  ;;  %501 = vmatpush3.bf16.msra.mxu0 %v546_v12 }
  0x17   : > { %515 = vmatpush3.bf16.msra.mxu1 %v541_v11  ;;  %v234_v17 = vor.u32 %v233_v15, %v229_v13 }
  0x18   : > { %516 = vmatprep.subr.bf16.mxu1 %v557_v1 }
  0x19   : > { %503 = vmatmul.mubr.msk.bf16.vlgmr.msra.gmra.mrb[0].mxu0 %vm259_vm1, %v234_v17 }
  0x1b   : > { %517 = vmatpush3.bf16.msra.mxu1 %v543_v16 }
  0x1c   : > { %518 = vmatprep.subr.bf16.mxu1 %v557_v1 }
  0x1f   : > { %519 = vmatpush3.bf16.msra.mxu1 %v545_v18 }
  0x20   : > { %520 = vmatprep.subr.bf16.mxu1 %v557_v1 }
  0x23   : > { %521 = vmatpush3.bf16.msra.mxu1 %v548_v19 }
  0x26   : > { %523 = vmatmul.mubr.bf16.vlgmr.msra.gmra.mrb[0].mxu1 %v197_v8 }
  0xec   : > { %v297_v20 = vpop.f32.mrb[0].mxu0 }
  0xed   : > { %v504_v21 = vpop.f32.mrb[1].mxu0 }
  0xee   : > { %v300_v22 = vpop.f32.mrb[2].mxu0 }
  0xef   : > { %v505_v23 = vpop.f32.mrb[3].mxu0 }
  0xf9   : > { %v385_v24 = vpop.f32.mrb[0].mxu1 }
  0xfa   : > { %v386_v26 = vadd.f32 %v385_v24, %v297_v20  ;;  %v524_v27 = vpop.f32.mrb[1].mxu1 }
  0xfb   : > { %v388_v28 = vpop.f32.mrb[2].mxu1 }
  0xfc   : > { %v398_v29 = vadd.f32 %v476_v25, %v386_v26  ;;  %v525_v30 = vpop.f32.mrb[3].mxu1 }
  0xfe   : > { %v399_v31 = vpack.c.bf16 %v398_v29, %v398_v29 }
 0x100   : > { %400 = vst [vmem:[%s195_s26] sm:$0xf] %v399_v31 }
 0x101 PF: > { %s14_s15 = sadd.s32 1, %s555_s15  }
 0x102   : > { %p11_p4 = scmp.ge.s32.totalorder %s14_s15, 4  }
 0x104   :  { %13 = sbr.rel (!%p11_p4) target bundleno = 1 (0x1), region = 66 }

// kernel: latent_predictor_forward.10
= control target key start
LH: loop header
LB: loop body
LE: loop exit
PB: predicated region body
PF: predicated region fallthrough
CT: control target
= control target key end

     0   :  { %v239_v1 = vmov 0   ;;  %v35_v18 = vlaneseq  ;;  %s320_s1 = inlined_call_operand.vmem [shape: bf16[128,256], index: 1, kind: input, shape index: {}]   ;;  %s321_s0 = inlined_call_operand.vmem [shape: bf16[16,128], index: 0, kind: input, shape index: {}]   ;;  %s322_s2 = inlined_call_operand.vmem [shape: f32[1,256], index: 2, kind: input, shape index: {}]   ;;  %s323_s3 = inlined_call_operand.vmem [shape: bf16[16,256], index: 3, kind: output, shape index: {}]  }
   0x1   :  { %v214_v0 = vld [vmem:[%s320_s1 + $0x4] ss:$8 sps:$4 sm:$0xff]   ;;  %163 = vmatprep.mubr.bf16.mxu0 %v239_v1  ;;  %v216_v2 = vld [vmem:[%s320_s1] ss:$8 sps:$4 sm:$0xff]   ;;  %v217_v3 = vld [vmem:[%s320_s1 + $0x14] ss:$8 sps:$4 sm:$0xff]  }
   0x2   :  { %131 = vmatprep.subr.bf16.mxu0 %v214_v0  ;;  %v219_v4 = vld [vmem:[%s320_s1 + $0x10] ss:$8 sps:$4 sm:$0xff]   ;;  %v220_v5 = vld [vmem:[%s320_s1 + $0x24] ss:$8 sps:$4 sm:$0xff]   ;;  %v222_v6 = vld [vmem:[%s320_s1 + $0x20] ss:$8 sps:$4 sm:$0xff]  }
   0x3   :  { %132 = vmatpush1.bf16.msra.mxu0 %v216_v2  ;;  %v223_v7 = vld [vmem:[%s320_s1 + $0x34] ss:$8 sps:$4 sm:$0xff]   ;;  %v225_v8 = vld [vmem:[%s320_s1 + $0x30] ss:$8 sps:$4 sm:$0xff]   ;;  %v226_v9 = vld [vmem:[%s320_s1 + $0x44] ss:$8 sps:$4 sm:$0xff]  }
   0x4   :  { %133 = vmatprep.subr.bf16.mxu0 %v217_v3  ;;  %v228_v10 = vld [vmem:[%s320_s1 + $0x40] ss:$8 sps:$4 sm:$0xff]   ;;  %v229_v11 = vld [vmem:[%s320_s1 + $0x54] ss:$8 sps:$4 sm:$0xff]   ;;  %v231_v12 = vld [vmem:[%s320_s1 + $0x50] ss:$8 sps:$4 sm:$0xff]  }
   0x5   :  { %v232_v13 = vld [vmem:[%s320_s1 + $0x64] ss:$8 sps:$4 sm:$0xff]   ;;  %v234_v14 = vld [vmem:[%s320_s1 + $0x60] ss:$8 sps:$4 sm:$0xff]   ;;  %v235_v15 = vld [vmem:[%s320_s1 + $0x74] ss:$8 sps:$4 sm:$0xff]  }
   0x6   :  { %v237_v16 = vld [vmem:[%s320_s1 + $0x70] ss:$8 sps:$4 sm:$0xff]   ;;  %v238_v17 = vld [vmem:[%s321_s0] sm:$0xff]   ;;  %v36_v19 = vshrl.u32 %v35_v18, 7 }
   0x7   :  { %134 = vmatpush1.bf16.msra.mxu0 %v219_v4  ;;  %v33_v21 = vld [vmem:[%s322_s2] sm:$0x3] }
   0x8   :  { %135 = vmatprep.subr.bf16.mxu0 %v220_v5  ;;  %v37_v20 = vsub.s32 0, %v36_v19  ;;  %v41_v22 = vsub.s32 1, %v36_v19 }
   0xa   :  { %v38_v23 = vrot.slane %v33_v21, %v37_v20  ;;  %v42_v24 = vrot.slane %v33_v21, %v41_v22 }
   0xb   :  { %136 = vmatpush1.bf16.msra.mxu0 %v222_v6 }
   0xc   :  { %137 = vmatprep.subr.bf16.mxu0 %v223_v7 }
   0xf   :  { %138 = vmatpush1.bf16.msra.mxu0 %v225_v8 }
  0x10   :  { %139 = vmatprep.subr.bf16.mxu0 %v226_v9 }
  0x13   :  { %140 = vmatpush1.bf16.msra.mxu0 %v228_v10 }
  0x14   :  { %141 = vmatprep.subr.bf16.mxu0 %v229_v11 }
  0x17   :  { %142 = vmatpush1.bf16.msra.mxu0 %v231_v12 }
  0x18   :  { %143 = vmatprep.subr.bf16.mxu0 %v232_v13 }
  0x1b   :  { %144 = vmatpush1.bf16.msra.mxu0 %v234_v14 }
  0x1c   :  { %145 = vmatprep.subr.bf16.mxu0 %v235_v15 }
  0x1f   :  { %146 = vmatpush1.bf16.msra.mxu0 %v237_v16 }
  0x22   :  { %164 = vmatmul.mubr.bf16.vlgmr.msra.gmra.mrb[0].mxu0 %v238_v17 }
  0xf5   :  { %v165_v25 = vpop.f32.mrb[0].mxu0 }
  0xf6   :  { %v166_v26 = vadd.f32 %v165_v25, %v38_v23  ;;  %v167_v27 = vpop.f32.mrb[1].mxu0 }
  0xf7   :  { %v168_v28 = vadd.f32 %v167_v27, %v42_v24  ;;  %v169_v29 = vpop.f32.mrb[2].mxu0 }
  0xf8   :  { %v170_v30 = vadd.f32 %v169_v29, %v38_v23  ;;  %v171_v31 = vpop.f32.mrb[3].mxu0 }
  0xf9   :  { %v211_v32 = vpack.c.bf16 %v168_v28, %v166_v26  ;;  %v172_v33 = vadd.f32 %v171_v31, %v42_v24 }
  0xfb   :  { %186 = vst [vmem:[%s323_s3] sm:$0xff] %v211_v32  ;;  %v212_v34 = vpack.c.bf16 %v172_v33, %v170_v30 }
  0xfd   :  { %187 = vst [vmem:[%s323_s3 + $0x8] sm:$0xff] %v212_v34 }

// kernel: latent_predictor_forward.9
= control target key start
LH: loop header
LB: loop body
LE: loop exit
PB: predicated region body
PF: predicated region fallthrough
CT: control target
= control target key end

     0   :  { %v208_v0 = vmov 0.0   ;;  %vm209_vm0 = vmmov 0   ;;  %s263_s1 = inlined_call_operand.vmem [shape: bf16[128,128], index: 1, kind: input, shape index: {}]   ;;  %s264_s0 = inlined_call_operand.vmem [shape: bf16[16,128], index: 0, kind: input, shape index: {}]   ;;  %s265_s2 = inlined_call_operand.vmem [shape: f32[1,128], index: 2, kind: input, shape index: {}]   ;;  %s266_s3 = inlined_call_operand.vmem [shape: bf16[16,128], index: 3, kind: output, shape index: {}]  }
   0x1   :  { %177 = vmatprep.subr.bf16.mxu0 %v208_v0  ;;  %v199_v1 = vld [vmem:[%s263_s1] sm:$0xff]   ;;  %193 = vmatprep.mubr.msk.bf16.mxu0 %vm209_vm0, %v208_v0  ;;  %v200_v2 = vld [vmem:[%s263_s1 + $0x8] sm:$0xff]   ;;  %v201_v3 = vld [vmem:[%s263_s1 + $0x10] sm:$0xff]  }
   0x2   :  { %178 = vmatpush3.bf16.msra.mxu0 %v199_v1  ;;  %v202_v4 = vld [vmem:[%s263_s1 + $0x18] sm:$0xff]   ;;  %v203_v5 = vld [vmem:[%s263_s1 + $0x20] sm:$0xff]   ;;  %v204_v6 = vld [vmem:[%s263_s1 + $0x28] sm:$0xff]  }
   0x3   :  { %179 = vmatprep.subr.bf16.mxu0 %v208_v0  ;;  %v205_v7 = vld [vmem:[%s263_s1 + $0x30] sm:$0xff]   ;;  %v206_v8 = vld [vmem:[%s263_s1 + $0x38] sm:$0xff]   ;;  %v207_v9 = vld [vmem:[%s264_s0] sm:$0xff]  }
   0x4   :  { %v149_v10 = vld [vmem:[%s265_s2] ss:$0 sm:$0xff] }
   0x6   :  { %180 = vmatpush3.bf16.msra.mxu0 %v200_v2 }
   0x7   :  { %181 = vmatprep.subr.bf16.mxu0 %v208_v0 }
   0xa   :  { %182 = vmatpush3.bf16.msra.mxu0 %v201_v3 }
   0xb   :  { %183 = vmatprep.subr.bf16.mxu0 %v208_v0 }
   0xe   :  { %184 = vmatpush3.bf16.msra.mxu0 %v202_v4 }
   0xf   :  { %185 = vmatprep.subr.bf16.mxu0 %v208_v0 }
  0x12   :  { %186 = vmatpush3.bf16.msra.mxu0 %v203_v5 }
  0x13   :  { %187 = vmatprep.subr.bf16.mxu0 %v208_v0 }
  0x16   :  { %188 = vmatpush3.bf16.msra.mxu0 %v204_v6 }
  0x17   :  { %189 = vmatprep.subr.bf16.mxu0 %v208_v0 }
  0x1a   :  { %190 = vmatpush3.bf16.msra.mxu0 %v205_v7 }
  0x1b   :  { %191 = vmatprep.subr.bf16.mxu0 %v208_v0 }
  0x1e   :  { %192 = vmatpush3.bf16.msra.mxu0 %v206_v8 }
  0x21   :  { %194 = vmatmul.mubr.bf16.vlgmr.msra.gmra.mrb[0].mxu0 %v207_v9 }
  0xf4   :  { %v128_v11 = vpop.f32.mrb[0].mxu0 }
  0xf5   :  { %v195_v12 = vpop.f32.mrb[1].mxu0  ;;  %v129_v14 = vadd.f32 %v149_v10, %v128_v11 }
  0xf6   :  { %v131_v13 = vpop.f32.mrb[2].mxu0 }
  0xf7   :  { %v132_v15 = vadd.f32 %v149_v10, %v131_v13  ;;  %v196_v16 = vpop.f32.mrb[3].mxu0 }
  0xf9   :  { %v166_v17 = vpack.c.bf16 %v132_v15, %v129_v14 }
  0xfb   :  { %167 = vst [vmem:[%s266_s3] sm:$0xff] %v166_v17  }

// kernel: latent_predictor_forward.13
= control target key start
LH: loop header
LB: loop body
LE: loop exit
PB: predicated region body
PF: predicated region fallthrough
CT: control target
= control target key end

     0   :  { %v231_v1 = vmov 0.0   ;;  %vm232_vm0 = vmmov 0   ;;  %s298_s0 = inlined_call_operand.vmem [shape: bf16[16,128], index: 0, kind: input, shape index: {}]   ;;  %s299_s1 = inlined_call_operand.vmem [shape: bf16[128,128], index: 1, kind: input, shape index: {}]   ;;  %s300_s2 = inlined_call_operand.vmem [shape: f32[1,128], index: 2, kind: input, shape index: {}]   ;;  %s301_s3 = inlined_call_operand.hbm [shape: f32[16,128], index: 3, kind: output, shape index: {}]  }
   0x1   :  { %v198_v0 = vld [vmem:[%s299_s1] sm:$0xff]   ;;  %173 = vmatprep.subr.bf16.mxu0 %v231_v1  ;;  %v199_v2 = vld [vmem:[%s299_s1 + $0x8] sm:$0xff]   ;;  %189 = vmatprep.mubr.msk.bf16.mxu0 %vm232_vm0, %v231_v1  ;;  %v200_v3 = vld [vmem:[%s299_s1 + $0x10] sm:$0xff]  }
   0x2   :  { %174 = vmatpush3.bf16.msra.mxu0 %v198_v0 }
   0x3   :  { %175 = vmatprep.subr.bf16.mxu0 %v231_v1 }
   0x6   :  { %176 = vmatpush3.bf16.msra.mxu0 %v199_v2 }
   0x7   :  { %177 = vmatprep.subr.bf16.mxu0 %v231_v1 }
   0x8   :  { %8 = vsyncpa [#allocation3], 0  ;;  %v201_v4 = vld [vmem:[%s299_s1 + $0x18] sm:$0xff]   ;;  %v202_v5 = vld [vmem:[%s299_s1 + $0x20] sm:$0xff]   ;;  %s233_s5 = smov [#allocation2]  }
   0x9   :  { %v203_v6 = vld [vmem:[%s299_s1 + $0x28] sm:$0xff]   ;;  %v204_v7 = vld [vmem:[%s299_s1 + $0x30] sm:$0xff]   ;;  %v205_v8 = vld [vmem:[%s299_s1 + $0x38] sm:$0xff]   ;;  %s143_s6 = sshll.u32 %s233_s5, 4  ;;  %s144_s6 = int_to_ptr.vmem [resolvable:$true] %s143_s6 }
   0xa   :  { %178 = vmatpush3.bf16.msra.mxu0 %v200_v3  ;;  %v206_v9 = vld [vmem:[%s298_s0] sm:$0xff]   ;;  %s207_s1 = scalar_lea.vmem %s144_s6, 256  ;;  %p212_p1 = scmp.lt.s32.totalorder %s144_s6, %s144_s6 }
   0xb   :  { %179 = vmatprep.subr.bf16.mxu0 %v231_v1  ;;  %v154_v10 = vld [vmem:[%s300_s2] ss:$0 sm:$0xff]  ;;  %p208_p0 = scmp.ne.s32.totalorder %s144_s6, %s207_s1  ;;  %p213_p2 = scmp.lt.s32.totalorder %s207_s1, %s207_s1 }
   0xd   :  { %p214_p3 = por %p213_p2, %p212_p1 }
   0xe   :  { %180 = vmatpush3.bf16.msra.mxu0 %v201_v4 }
   0xf   :  { %181 = vmatprep.subr.bf16.mxu0 %v231_v1  ;;  %p215_p4 = pnand %p214_p3, %p208_p0 }
  0x12   :  { %182 = vmatpush3.bf16.msra.mxu0 %v202_v5 }
  0x13   :  { %183 = vmatprep.subr.bf16.mxu0 %v231_v1 }
  0x16   :  { %184 = vmatpush3.bf16.msra.mxu0 %v203_v6 }
  0x17   :  { %185 = vmatprep.subr.bf16.mxu0 %v231_v1 }
  0x1a   :  { %186 = vmatpush3.bf16.msra.mxu0 %v204_v7 }
  0x1b   :  { %187 = vmatprep.subr.bf16.mxu0 %v231_v1 }
  0x1e   :  { %188 = vmatpush3.bf16.msra.mxu0 %v205_v8 }
  0x21   :  { %190 = vmatmul.mubr.bf16.vlgmr.msra.gmra.mrb[0].mxu0 %v206_v9 }
  0xf4   :  { %v129_v11 = vpop.f32.mrb[0].mxu0 }
  0xf5   :  { %v130_v12 = vadd.f32 %v154_v10, %v129_v11  ;;  %v191_v13 = vpop.f32.mrb[1].mxu0 }
  0xf6   :  { %v132_v14 = vpop.f32.mrb[2].mxu0 }
  0xf7   :  { %136 = vst [vmem:[#allocation2] sm:$0xff] %v130_v12  ;;  %v133_v15 = vadd.f32 %v154_v10, %v132_v14  ;;  %v192_v16 = vpop.f32.mrb[3].mxu0 }
  0xf9   :  { %137 = vst [vmem:[#allocation2 + $0x8] sm:$0xff] %v133_v15 }
  0xfa   :  { %218 = shalt.err (!%p215_p4)
}
  0xfb   :  { %s219_s7 = scalar_lea.hbm %s301_s3, 256 }
  0xfc   :  { %p220_p5 = scmp.ne.s32.totalorder %s301_s3, %s219_s7  ;;  %p223_p6 = scmp.lt.u32.totalorder %s219_s7, %s301_s3 }
  0xfe   :  { %p225_p7 = pnand %p223_p6, %p220_p5 }
 0x100   :  { %228 = shalt.err (!%p225_p7)
}
 0x101   :  { %s234_s12 = smov 128   ;;  %s235_s13 = smov 8  }
 0x102   :  { %149 = dma.vmem_to_hbm [thread:$0]  %s144_s6, 256, %s301_s3, [#allocation3], %s234_s12, %s234_s12, %s235_s13  }
 0x103   :  { %229 = dma.done.wait [#allocation3], 256  }
 0x104   :  { %230 = vsyncadd [#allocation3], 4294967040 }
 0x105   :  { %153 = vsyncpa [#allocation3], 1 }

// kernel: latent_predictor_forward.12
= control target key start
LH: loop header
LB: loop body
LE: loop exit
PB: predicated region body
PF: predicated region fallthrough
CT: control target
= control target key end

     0   :  { %v426_v0 = vmov 0.0   ;;  %vm427_vm0 = vmmov 0   ;;  %s534_s1 = inlined_call_operand.vmem [shape: bf16[128,128], index: 1, kind: input, shape index: {}]   ;;  %s535_s3 = inlined_call_operand.vmem [shape: bf16[128,128], index: 3, kind: input, shape index: {}]   ;;  %s536_s0 = inlined_call_operand.vmem [shape: bf16[16,128], index: 0, kind: input, shape index: {}]   ;;  %s537_s2 = inlined_call_operand.vmem [shape: f32[1,128], index: 2, kind: input, shape index: {}]   ;;  %s538_s4 = inlined_call_operand.vmem [shape: f32[1,128], index: 4, kind: input, shape index: {}]   ;;  %s539_s5 = inlined_call_operand.vmem [shape: f32[1,128], index: 5, kind: input, shape index: {}]   ;;  %s540_s6 = inlined_call_operand.vmem [shape: f32[1,128], index: 6, kind: input, shape index: {}]   ;;  %s541_s7 = inlined_call_operand.vmem [shape: bf16[16,128], index: 7, kind: output, shape index: {}]  }
   0x1   :  { %363 = vmatprep.subr.bf16.mxu0 %v426_v0  ;;  %v405_v1 = vld [vmem:[%s534_s1] sm:$0xff]   ;;  %379 = vmatprep.mubr.msk.bf16.mxu0 %vm427_vm0, %v426_v0  ;;  %v406_v2 = vld [vmem:[%s534_s1 + $0x8] sm:$0xff]   ;;  %v407_v3 = vld [vmem:[%s534_s1 + $0x10] sm:$0xff]  }
   0x2   :  { %383 = vmatprep.subr.bf16.mxu1 %v426_v0  ;;  %399 = vmatprep.mubr.msk.bf16.mxu1 %vm427_vm0, %v426_v0  ;;  %v414_v4 = vld [vmem:[%s535_s3] sm:$0xff]   ;;  %v408_v5 = vld [vmem:[%s534_s1 + $0x18] sm:$0xff]   ;;  %v415_v6 = vld [vmem:[%s535_s3 + $0x8] sm:$0xff]  }
   0x3   :  { %364 = vmatpush3.bf16.msra.mxu0 %v405_v1  ;;  %384 = vmatpush3.bf16.msra.mxu1 %v414_v4  ;;  %v409_v7 = vld [vmem:[%s534_s1 + $0x20] sm:$0xff]   ;;  %v416_v8 = vld [vmem:[%s535_s3 + $0x10] sm:$0xff]   ;;  %v410_v9 = vld [vmem:[%s534_s1 + $0x28] sm:$0xff]  }
   0x4   :  { %365 = vmatprep.subr.bf16.mxu0 %v426_v0  ;;  %385 = vmatprep.subr.bf16.mxu1 %v426_v0  ;;  %v417_v10 = vld [vmem:[%s535_s3 + $0x18] sm:$0xff]   ;;  %v411_v11 = vld [vmem:[%s534_s1 + $0x30] sm:$0xff]   ;;  %v418_v12 = vld [vmem:[%s535_s3 + $0x20] sm:$0xff]  }
   0x5   :  { %v412_v13 = vld [vmem:[%s534_s1 + $0x38] sm:$0xff]   ;;  %v419_v14 = vld [vmem:[%s535_s3 + $0x28] sm:$0xff]   ;;  %v413_v15 = vld [vmem:[%s536_s0] sm:$0xff]  }
   0x6   :  { %v420_v16 = vld [vmem:[%s535_s3 + $0x30] sm:$0xff]   ;;  %v421_v17 = vld [vmem:[%s535_s3 + $0x38] sm:$0xff]   ;;  %v315_v18 = vld [vmem:[%s537_s2] ss:$0 sm:$0xff] }
   0x7   :  { %366 = vmatpush3.bf16.msra.mxu0 %v406_v2  ;;  %386 = vmatpush3.bf16.msra.mxu1 %v415_v6  ;;  %v325_v26 = vld [vmem:[%s538_s4] ss:$0 sm:$0xff] }
   0x8   :  { %367 = vmatprep.subr.bf16.mxu0 %v426_v0  ;;  %387 = vmatprep.subr.bf16.mxu1 %v426_v0  ;;  %v334_v49 = vld [vmem:[%s539_s5] ss:$0 sm:$0xff] }
   0x9   :  { %v335_v53 = vld [vmem:[%s540_s6] ss:$0 sm:$0xff] }
   0xb   :  { %368 = vmatpush3.bf16.msra.mxu0 %v407_v3  ;;  %388 = vmatpush3.bf16.msra.mxu1 %v416_v8 }
   0xc   :  { %369 = vmatprep.subr.bf16.mxu0 %v426_v0  ;;  %389 = vmatprep.subr.bf16.mxu1 %v426_v0 }
   0xf   :  { %370 = vmatpush3.bf16.msra.mxu0 %v408_v5  ;;  %390 = vmatpush3.bf16.msra.mxu1 %v417_v10 }
  0x10   :  { %371 = vmatprep.subr.bf16.mxu0 %v426_v0  ;;  %391 = vmatprep.subr.bf16.mxu1 %v426_v0 }
  0x13   :  { %372 = vmatpush3.bf16.msra.mxu0 %v409_v7  ;;  %392 = vmatpush3.bf16.msra.mxu1 %v418_v12 }
  0x14   :  { %373 = vmatprep.subr.bf16.mxu0 %v426_v0  ;;  %393 = vmatprep.subr.bf16.mxu1 %v426_v0 }
  0x17   :  { %374 = vmatpush3.bf16.msra.mxu0 %v410_v9  ;;  %394 = vmatpush3.bf16.msra.mxu1 %v419_v14 }
  0x18   :  { %375 = vmatprep.subr.bf16.mxu0 %v426_v0  ;;  %395 = vmatprep.subr.bf16.mxu1 %v426_v0 }
  0x1b   :  { %376 = vmatpush3.bf16.msra.mxu0 %v411_v11  ;;  %396 = vmatpush3.bf16.msra.mxu1 %v420_v16 }
  0x1c   :  { %377 = vmatprep.subr.bf16.mxu0 %v426_v0  ;;  %397 = vmatprep.subr.bf16.mxu1 %v426_v0 }
  0x1f   :  { %378 = vmatpush3.bf16.msra.mxu0 %v412_v13  ;;  %398 = vmatpush3.bf16.msra.mxu1 %v421_v17 }
  0x22   :  { %380 = vmatmul.mubr.bf16.vlgmr.msra.gmra.mrb[0].mxu0 %v413_v15 }
  0xf5   :  { %v140_v19 = vpop.f32.mrb[0].mxu0 }
  0xf6   :  { %v381_v20 = vpop.f32.mrb[1].mxu0  ;;  %v141_v22 = vadd.f32 %v315_v18, %v140_v19 }
  0xf7   :  { %v143_v21 = vpop.f32.mrb[2].mxu0 }
  0xf8   :  { %v144_v23 = vadd.f32 %v315_v18, %v143_v21  ;;  %v382_v24 = vpop.f32.mrb[3].mxu0 }
  0xfa   :  { %v147_v25 = vpack.c.bf16 %v144_v23, %v141_v22 }
  0xfc   :  { %400 = vmatmul.mubr.bf16.vlgmr.msra.gmra.mrb[0].mxu1 %v147_v25 }
 0x1cf   :  { %v253_v27 = vpop.f32.mrb[0].mxu1 }
 0x1d0   :  { %v254_v28 = vadd.f32 %v325_v26, %v253_v27  ;;  %v401_v29 = vpop.f32.mrb[1].mxu1 }
 0x1d1   :  { %v256_v30 = vpop.f32.mrb[2].mxu1 }
 0x1d2   :  { %260 = vadd.xlane.f32.xlu0 %v254_v28  ;;  %v402_v31 = vpop.f32.mrb[3].mxu1  ;;  %v257_v32 = vadd.f32 %v325_v26, %v256_v30 }
 0x1d6   :  { %262 = vadd.xlane.f32.xlu0 %v257_v32 }
 0x25f   :  { %v261_v33 = vpop.xlane.xlu0 %260 }
 0x260   :  { %v265_v34 = vmul.f32 0.0078125, %v261_v33 }
 0x262   :  { %v267_v35 = vsub.f32 %v254_v28, %v265_v34 }
 0x263   :  { %v263_v36 = vpop.xlane.xlu0 %262 }
 0x264   :  { %v266_v37 = vmul.f32 0.0078125, %v263_v36  ;;  %v269_v38 = vmul.f32 %v267_v35, %v267_v35 }
 0x266   :  { %v268_v39 = vsub.f32 %v257_v32, %v266_v37  ;;  %271 = vadd.xlane.f32.xlu1 %v269_v38 }
 0x268   :  { %v270_v40 = vmul.f32 %v268_v39, %v268_v39 }
 0x26a   :  { %273 = vadd.xlane.f32.xlu1 %v270_v40 }
 0x2f3   :  { %v272_v41 = vpop.xlane.xlu1 %271 }
 0x2f4   :  { %v275_v42 = vmul.f32 0.0078125, %v272_v41 }
 0x2f6   :  { %v277_v43 = vadd.f32 1e-05, %v275_v42 }
 0x2f7   :  { %v274_v44 = vpop.xlane.xlu1 %273 }
 0x2f8   :  { %422 = vrsqrt.f32 %v277_v43  ;;  %v276_v45 = vmul.f32 0.0078125, %v274_v44 }
 0x2fa   :  { %v278_v46 = vadd.f32 1e-05, %v276_v45 }
 0x2fc   :  { %424 = vrsqrt.f32 %v278_v46 }
 0x302   :  { %v423_v47 = vpop.eup %422 }
 0x303   :  { %v281_v48 = vmul.f32 %v423_v47, %v267_v35 }
 0x305   :  { %v290_v51 = vmul.f32 %v334_v49, %v281_v48 }
 0x306   :  { %v425_v50 = vpop.eup %424 }
 0x307   :  { %v282_v52 = vmul.f32 %v425_v50, %v268_v39  ;;  %v299_v55 = vadd.f32 %v335_v53, %v290_v51 }
 0x309   :  { %v291_v54 = vmul.f32 %v334_v49, %v282_v52 }
 0x30b   :  { %v300_v56 = vadd.f32 %v335_v53, %v291_v54 }
 0x30d   :  { %v343_v57 = vpack.c.bf16 %v300_v56, %v299_v55 }
 0x30f   :  { %344 = vst [vmem:[%s541_s7] sm:$0xff] %v343_v57  }

// kernel: latent_predictor_forward.11
= control target key start
LH: loop header
LB: loop body
LE: loop exit
PB: predicated region body
PF: predicated region fallthrough
CT: control target
= control target key end

     0   :  { %s1501_s12 = smov 0   ;;  %s1503_s13 = smov 0   ;;  %s1712_s0 = inlined_call_operand.vmem [shape: bf16[2,8,8,16], index: 0, kind: input, shape index: {}]   ;;  %s1713_s1 = inlined_call_operand.vmem [shape: bf16[2,8,8,16], index: 1, kind: input, shape index: {}]   ;;  %s1714_s2 = inlined_call_operand.vmem [shape: bf16[2,8,8,16], index: 2, kind: input, shape index: {}]   ;;  %s1715_s3 = inlined_call_operand.vmem [shape: bf16[2,8,8,16], index: 3, kind: output, shape index: {}]  }
   0x1   :  { %s1505_s14 = smov 0  }
   0x2 LB: > { %s25_s15 = sadd.s32 1, %s1473_s13  ;;  %p1238_p0 = scmp.ge.s32.totalorder %s1477_s14, 1  ;;  %s1477_s14 = sphi %s1505_s14, %s13_s14   ;;  %s1473_s13 = sphi %s1503_s13, %s1717_s13   ;;  %s1469_s12 = sphi %s1501_s12, %s1716_s12  }
   0x3   : > { %p27_p1 = scmp.ge.s32.totalorder %s25_s15, 2  ;;  %p176_p2 = scmp.lt.s32.totalorder %s1477_s14, 3 }
   0x5   : > { %s1719_s15 = smov (%p27_p1, %s25_s15), 0  ;;  %p177_p3 = pnand %p1238_p0, %p176_p2 }
   0x6   : > { %p216_p4 = scmp.lt.s32.totalorder (!%p177_p3), %s1469_s12, 1  ;;  %v1479_v0 = vmov (!%p177_p3), 0.0   ;;  %vm1480_vm0 = vmmov (!%p177_p3), 0   ;;  %vm267_vm1 = vcmask (!%p177_p3), 130048   ;;  %vm644_vm2 = vcmask (!%p177_p3), 64512  }
   0x7   : > { %180 = sbr.rel (%p177_p3) target bundleno = 799 (0x31f), region = 32  ;;  %1301 = vmatprep.subr.bf16.mxu0 (!%p177_p3), %v1479_v0  ;;  %1307 = vmatprep.subr.bf16.mxu1 (!%p177_p3), %v1479_v0  ;;  %vm744_vm3 = vcmask (!%p177_p3), 1043456   ;;  %vm1118_vm4 = vcmask (!%p177_p3), 125952  }
   0x8   : > { %1303 = vmatprep.mubr.msk.bf16.mxu0 (!%p177_p3), %vm1480_vm0, %v1479_v0  ;;  %1309 = vmatprep.mubr.msk.bf16.mxu1 (!%p177_p3), %vm1480_vm0, %v1479_v0 }
   0xe   : > { %s1721_s12 = smov (!%p216_p4, %s1469_s12), 1 }
   0xf   : > { %s1525_s16 = sshll.u32 %s1721_s12, 5 }
  0x10   : > { %s1531_s19 = scalar_lea.vmem %s1713_s1, %s1525_s16  ;;  %s1541_s22 = scalar_lea.vmem %s1712_s0, %s1525_s16 }
  0x11   : > { %v251_v1 = vld [vmem:[%s1531_s19] sm:$0xf]  ;;  %v252_v2 = vld [vmem:[%s1531_s19 + $0x4] sm:$0xf]  ;;  %v253_v5 = vld [vmem:[%s1531_s19 + $0x8] sm:$0xf]  ;;  %s233_s25 = scalar_lea.vmem %s1714_s2, %s1525_s16  ;;  %s1685_s28 = scalar_lea.vmem %s1715_s3, %s1525_s16 }
  0x12   : > { %v272_v3 = vsel %vm267_vm1, %v251_v1, 0  ;;  %v318_v4 = vsel %vm267_vm1, %v252_v2, 0  ;;  %v254_v6 = vld [vmem:[%s1531_s19 + $0xc] sm:$0xf]  ;;  %v243_v7 = vld [vmem:[%s1541_s22] sm:$0xf] }
  0x13   : > { %1302 = vmatpush3.bf16.xpose.msra.mxu0 %v272_v3  ;;  %1308 = vmatpush3.bf16.xpose.msra.mxu1 %v318_v4  ;;  %v244_v8 = vld [vmem:[%s1541_s22 + $0x4] sm:$0xf]  ;;  %v364_v9 = vsel %vm267_vm1, %v253_v5, 0  ;;  %v410_v10 = vsel %vm267_vm1, %v254_v6, 0  ;;  %v255_v11 = vld [vmem:[%s1531_s19 + $0x10] sm:$0xf] }
  0x14   : > { %1313 = vmatprep.subr.bf16.mxu0 %v1479_v0  ;;  %1319 = vmatprep.subr.bf16.mxu1 %v1479_v0  ;;  %v256_v12 = vld [vmem:[%s1531_s19 + $0x14] sm:$0xf]  ;;  %v245_v13 = vld [vmem:[%s1541_s22 + $0x8] sm:$0xf]  ;;  %v246_v14 = vld [vmem:[%s1541_s22 + $0xc] sm:$0xf] }
  0x15   : > { %v456_v15 = vsel %vm267_vm1, %v255_v11, 0  ;;  %v502_v16 = vsel %vm267_vm1, %v256_v12, 0  ;;  %v257_v17 = vld [vmem:[%s1531_s19 + $0x18] sm:$0xf]  ;;  %v258_v18 = vld [vmem:[%s1531_s19 + $0x1c] sm:$0xf] }
  0x16   : > { %v247_v19 = vld [vmem:[%s1541_s22 + $0x10] sm:$0xf]  ;;  %v248_v20 = vld [vmem:[%s1541_s22 + $0x14] sm:$0xf]  ;;  %v548_v21 = vsel %vm267_vm1, %v257_v17, 0  ;;  %v594_v22 = vsel %vm267_vm1, %v258_v18, 0 }
  0x17   : > { %v249_v23 = vld [vmem:[%s1541_s22 + $0x18] sm:$0xf]  ;;  %v250_v24 = vld [vmem:[%s1541_s22 + $0x1c] sm:$0xf] }
  0x1a   : > { %1304 = vmatmul.mubr.msk.bf16.vlgmr.msra.gmra.mrb[0].mxu0 %vm267_vm1, %v243_v7  ;;  %1310 = vmatmul.mubr.msk.bf16.vlgmr.msra.gmra.mrb[0].mxu1 %vm267_vm1, %v244_v8 }
  0x1b   : > { %1314 = vmatpush3.bf16.xpose.msra.mxu0 %v364_v9  ;;  %1320 = vmatpush3.bf16.xpose.msra.mxu1 %v410_v10 }
  0x1c   : > { %1315 = vmatprep.mubr.msk.bf16.mxu0 %vm1480_vm0, %v1479_v0  ;;  %1321 = vmatprep.mubr.msk.bf16.mxu1 %vm1480_vm0, %v1479_v0 }
  0x1d   : > { %1325 = vmatprep.subr.bf16.mxu0 %v1479_v0  ;;  %1331 = vmatprep.subr.bf16.mxu1 %v1479_v0 }
  0x22   : > { %1316 = vmatmul.mubr.msk.bf16.vlgmr.msra.gmra.mrb[4].mxu0 %vm267_vm1, %v245_v13  ;;  %1322 = vmatmul.mubr.msk.bf16.vlgmr.msra.gmra.mrb[4].mxu1 %vm267_vm1, %v246_v14 }
  0x23   : > { %1326 = vmatpush3.bf16.xpose.msra.mxu0 %v456_v15  ;;  %1332 = vmatpush3.bf16.xpose.msra.mxu1 %v502_v16 }
  0x24   : > { %1327 = vmatprep.mubr.msk.bf16.mxu0 %vm1480_vm0, %v1479_v0  ;;  %1333 = vmatprep.mubr.msk.bf16.mxu1 %vm1480_vm0, %v1479_v0 }
  0x25   : > { %1337 = vmatprep.subr.bf16.mxu0 %v1479_v0  ;;  %1343 = vmatprep.subr.bf16.mxu1 %v1479_v0 }
  0x2a   : > { %1328 = vmatmul.mubr.msk.bf16.vlgmr.msra.gmra.mrb[8].mxu0 %vm267_vm1, %v247_v19  ;;  %1334 = vmatmul.mubr.msk.bf16.vlgmr.msra.gmra.mrb[8].mxu1 %vm267_vm1, %v248_v20 }
  0x2b   : > { %1338 = vmatpush3.bf16.xpose.msra.mxu0 %v548_v21  ;;  %1344 = vmatpush3.bf16.xpose.msra.mxu1 %v594_v22 }
  0x2c   : > { %1339 = vmatprep.mubr.msk.bf16.mxu0 %vm1480_vm0, %v1479_v0  ;;  %1345 = vmatprep.mubr.msk.bf16.mxu1 %vm1480_vm0, %v1479_v0 }
  0x2d   : > { %1349 = vmatprep.subr.bf16.mxu0 %v1479_v0  ;;  %1355 = vmatprep.subr.bf16.mxu1 %v1479_v0 }
  0x32   : > { %1340 = vmatmul.mubr.msk.bf16.vlgmr.msra.gmra.mrb[12].mxu0 %vm267_vm1, %v249_v23  ;;  %1346 = vmatmul.mubr.msk.bf16.vlgmr.msra.gmra.mrb[12].mxu1 %vm267_vm1, %v250_v24 }
  0x33   : > { %1351 = vmatprep.mubr.msk.bf16.mxu0 %vm1480_vm0, %v1479_v0  ;;  %1357 = vmatprep.mubr.msk.bf16.mxu1 %vm1480_vm0, %v1479_v0 }
  0xed   : > { %v308_v25 = vpop.f32.mrb[0].mxu0  ;;  %v354_v26 = vpop.f32.mrb[0].mxu1 }
  0xee   : > { %v636_v27 = vmul.f32 0.25, %v308_v25  ;;  %v1305_v28 = vpop.f32.mrb[1].mxu0  ;;  %v637_v29 = vmul.f32 0.25, %v354_v26  ;;  %v1311_v30 = vpop.f32.mrb[1].mxu1 }
  0xef   : > { %v311_v31 = vpop.f32.mrb[2].mxu0  ;;  %v357_v32 = vpop.f32.mrb[2].mxu1 }
  0xf0   : > { %v1306_v33 = vpop.f32.mrb[3].mxu0  ;;  %v645_v34 = vsel %vm644_vm2, %v636_v27, -inf  ;;  %v1312_v35 = vpop.f32.mrb[3].mxu1  ;;  %v648_v36 = vsel %vm644_vm2, %v637_v29, -inf }
  0xf1   : > { %646 = vmax.xlane.f32.xlu0 %v645_v34 }
  0xf5   : > { %649 = vmax.xlane.f32.xlu0 %v648_v36  ;;  %v400_v37 = vpop.f32.mrb[4].mxu0  ;;  %v446_v38 = vpop.f32.mrb[4].mxu1 }
  0xf6   : > { %v638_v39 = vmul.f32 0.25, %v400_v37  ;;  %v1317_v40 = vpop.f32.mrb[5].mxu0  ;;  %v639_v41 = vmul.f32 0.25, %v446_v38  ;;  %v1323_v42 = vpop.f32.mrb[5].mxu1 }
  0xf7   : > { %v403_v43 = vpop.f32.mrb[6].mxu0  ;;  %v449_v44 = vpop.f32.mrb[6].mxu1 }
  0xf8   : > { %v1318_v45 = vpop.f32.mrb[7].mxu0  ;;  %v651_v46 = vsel %vm644_vm2, %v638_v39, -inf  ;;  %v1324_v47 = vpop.f32.mrb[7].mxu1  ;;  %v654_v48 = vsel %vm644_vm2, %v639_v41, -inf }
  0xf9   : > { %652 = vmax.xlane.f32.xlu1 %v651_v46 }
  0xfd   : > { %v538_v49 = vpop.f32.mrb[8].mxu1  ;;  %655 = vmax.xlane.f32.xlu1 %v654_v48  ;;  %v492_v50 = vpop.f32.mrb[8].mxu0 }
  0xfe   : > { %v641_v51 = vmul.f32 0.25, %v538_v49  ;;  %v640_v52 = vmul.f32 0.25, %v492_v50  ;;  %v1329_v53 = vpop.f32.mrb[9].mxu0  ;;  %v1335_v54 = vpop.f32.mrb[9].mxu1  ;;  %v259_v50 = vld [vmem:[%s233_s25] sm:$0xf] }
  0xff   : > { %v541_v55 = vpop.f32.mrb[10].mxu1  ;;  %v495_v56 = vpop.f32.mrb[10].mxu0  ;;  %v261_v54 = vld [vmem:[%s233_s25 + $0x8] sm:$0xf] }
 0x100   : > { %v660_v57 = vsel %vm644_vm2, %v641_v51, -inf  ;;  %v657_v58 = vsel %vm644_vm2, %v640_v52, -inf  ;;  %v1330_v59 = vpop.f32.mrb[11].mxu0  ;;  %v1336_v60 = vpop.f32.mrb[11].mxu1  ;;  %v838_v55 = vsel %vm744_vm3, %v261_v54, 0 }
 0x101   : > { %661 = vmax.xlane.f32.xlu1 %v660_v57  ;;  %658 = vmax.xlane.f32.xlu0 %v657_v58  ;;  %v262_v56 = vld [vmem:[%s233_s25 + $0xc] sm:$0xf]  ;;  %v263_v58 = vld [vmem:[%s233_s25 + $0x10] sm:$0xf]  ;;  %v264_v60 = vld [vmem:[%s233_s25 + $0x14] sm:$0xf] }
 0x102   : > { %v884_v57 = vsel %vm744_vm3, %v262_v56, 0  ;;  %v930_v59 = vsel %vm744_vm3, %v263_v58, 0 }
 0x105   : > { %v584_v61 = vpop.f32.mrb[12].mxu0  ;;  %v630_v62 = vpop.f32.mrb[12].mxu1 }
 0x106   : > { %v642_v63 = vmul.f32 0.25, %v584_v61  ;;  %v643_v1 = vmul.f32 0.25, %v630_v62  ;;  %v1341_v2 = vpop.f32.mrb[13].mxu0  ;;  %v1347_v3 = vpop.f32.mrb[13].mxu1  ;;  %v976_v61 = vsel %vm744_vm3, %v264_v60, 0 }
 0x107   : > { %v633_v4 = vpop.f32.mrb[14].mxu1  ;;  %v587_v5 = vpop.f32.mrb[14].mxu0  ;;  %v265_v62 = vld [vmem:[%s233_s25 + $0x18] sm:$0xf] }
 0x108   : > { %v666_v6 = vsel %vm644_vm2, %v643_v1, -inf  ;;  %v663_v7 = vsel %vm644_vm2, %v642_v63, -inf  ;;  %v1342_v8 = vpop.f32.mrb[15].mxu0  ;;  %v1348_v9 = vpop.f32.mrb[15].mxu1 }
 0x109   : > { %667 = vmax.xlane.f32.xlu1 %v666_v6  ;;  %664 = vmax.xlane.f32.xlu0 %v663_v7 }
 0x17e   : > { %v647_v10 = vpop.xlane.xlu0 %646 }
 0x17f   : > { %v669_v11 = vsub.f32 %v636_v27, %v647_v10 }
 0x181   : > { %v677_v12 = vmul.f32 1.442695, %v669_v11 }
 0x182   : > { %v650_v13 = vpop.xlane.xlu0 %649 }
 0x183   : > { %1423 = vpow2.f32 %v677_v12  ;;  %v670_v14 = vsub.f32 %v637_v29, %v650_v13 }
 0x185   : > { %v679_v15 = vmul.f32 1.442695, %v670_v14 }
 0x186   : > { %v653_v16 = vpop.xlane.xlu1 %652 }
 0x187   : > { %1425 = vpow2.f32 %v679_v15  ;;  %v671_v17 = vsub.f32 %v638_v39, %v653_v16 }
 0x189   : > { %v681_v18 = vmul.f32 1.442695, %v671_v17 }
 0x18a   : > { %v656_v19 = vpop.xlane.xlu1 %655 }
 0x18b   : > { %1427 = vpow2.f32 %v681_v18  ;;  %v672_v20 = vsub.f32 %v639_v41, %v656_v19 }
 0x18d   : > { %v1603_v21 = vpop.eup %1423  ;;  %v683_v22 = vmul.f32 1.442695, %v672_v20 }
 0x18e   : > { %v662_v23 = vpop.xlane.xlu1 %661  ;;  %v659_v24 = vpop.xlane.xlu0 %658  ;;  %v693_v25 = vsel %vm644_vm2, %v1603_v21, 0.0 }
 0x18f   : > { %1429 = vpow2.f32 %v683_v22  ;;  %v674_v26 = vsub.f32 %v641_v51, %v662_v23  ;;  %v673_v27 = vsub.f32 %v640_v52, %v659_v24  ;;  %694 = vadd.xlane.f32.xlu0 %v693_v25  ;;  %v746_v51 = vsel %vm744_vm3, %v259_v50, 0  ;;  %v260_v52 = vld [vmem:[%s233_s25 + $0x4] sm:$0xf] }
 0x190   : > { %1350 = vmatpush3.bf16.msra.mxu0 %v746_v51  ;;  %v792_v53 = vsel %vm744_vm3, %v260_v52, 0 }
 0x191   : > { %v1607_v28 = vpop.eup %1425  ;;  %v687_v29 = vmul.f32 1.442695, %v674_v26  ;;  %v685_v30 = vmul.f32 1.442695, %v673_v27  ;;  %1361 = vmatprep.subr.bf16.mxu0 %v1479_v0  ;;  %1356 = vmatpush3.bf16.msra.mxu1 %v792_v53 }
 0x192   : > { %v696_v31 = vsel %vm644_vm2, %v1607_v28, 0.0  ;;  %1367 = vmatprep.subr.bf16.mxu1 %v1479_v0 }
 0x193   : > { %1431 = vpow2.f32 %v687_v29  ;;  %697 = vadd.xlane.f32.xlu1 %v696_v31 }
 0x194   : > { %1433 = vpow2.f32 %v685_v30 }
 0x195   : > { %v1611_v32 = vpop.eup %1427 }
 0x196   : > { %v668_v33 = vpop.xlane.xlu1 %667  ;;  %v665_v34 = vpop.xlane.xlu0 %664  ;;  %v699_v35 = vsel %vm644_vm2, %v1611_v32, 0.0 }
 0x197   : > { %v676_v36 = vsub.f32 %v643_v1, %v668_v33  ;;  %v675_v37 = vsub.f32 %v642_v63, %v665_v34  ;;  %700 = vadd.xlane.f32.xlu0 %v699_v35  ;;  %v1022_v63 = vsel %vm744_vm3, %v265_v62, 0  ;;  %v266_v1 = vld [vmem:[%s233_s25 + $0x1c] sm:$0xf] }
 0x198   : > { %v1068_v2 = vsel %vm744_vm3, %v266_v1, 0 }
 0x199   : > { %v1615_v38 = vpop.eup %1429  ;;  %v691_v39 = vmul.f32 1.442695, %v676_v36  ;;  %v689_v40 = vmul.f32 1.442695, %v675_v37 }
 0x19a   : > { %v702_v41 = vsel %vm644_vm2, %v1615_v38, 0.0 }
 0x19b   : > { %1435 = vpow2.f32 %v691_v39  ;;  %703 = vadd.xlane.f32.xlu1 %v702_v41 }
 0x19c   : > { %1437 = vpow2.f32 %v689_v40 }
 0x19d   : > { %v1619_v42 = vpop.eup %1431 }
 0x19e   : > { %v1621_v43 = vpop.eup %1433  ;;  %v708_v44 = vsel %vm644_vm2, %v1619_v42, 0.0 }
 0x19f   : > { %709 = vadd.xlane.f32.xlu1 %v708_v44  ;;  %v705_v45 = vsel %vm644_vm2, %v1621_v43, 0.0 }
 0x1a0   : > { %706 = vadd.xlane.f32.xlu0 %v705_v45 }
 0x1a5   : > { %v1627_v46 = vpop.eup %1435 }
 0x1a6   : > { %v1629_v47 = vpop.eup %1437  ;;  %v714_v48 = vsel %vm644_vm2, %v1627_v46, 0.0 }
 0x1a7   : > { %715 = vadd.xlane.f32.xlu1 %v714_v48  ;;  %v711_v49 = vsel %vm644_vm2, %v1629_v47, 0.0 }
 0x1a8   : > { %712 = vadd.xlane.f32.xlu0 %v711_v49 }
 0x21c   : > { %v695_v3 = vpop.xlane.xlu0 %694 }
 0x21d   : > { %1439 = vrcp.f32 %v695_v3 }
 0x220   : > { %v698_v4 = vpop.xlane.xlu1 %697 }
 0x221   : > { %1441 = vrcp.f32 %v698_v4 }
 0x224   : > { %v701_v5 = vpop.xlane.xlu0 %700 }
 0x225   : > { %1443 = vrcp.f32 %v701_v5 }
 0x227   : > { %v1440_v6 = vpop.eup %1439 }
 0x228   : > { %v725_v7 = vmul.f32 %v1440_v6, %v1603_v21  ;;  %v704_v8 = vpop.xlane.xlu1 %703 }
 0x229   : > { %1445 = vrcp.f32 %v704_v8 }
 0x22a   : > { %v733_v9 = vpack.c.bf16 %v725_v7, %v725_v7 }
 0x22b   : > { %v1442_v10 = vpop.eup %1441 }
 0x22c   : > { %v726_v11 = vmul.f32 %v1442_v10, %v1607_v28  ;;  %v710_v12 = vpop.xlane.xlu1 %709  ;;  %1352 = vmatmul.mubr.msk.bf16.vlgmr.msra.gmra.mrb[16].mxu0 %vm644_vm2, %v733_v9 }
 0x22d   : > { %1447 = vrcp.f32 %v710_v12  ;;  %v707_v13 = vpop.xlane.xlu0 %706  ;;  %1362 = vmatpush3.bf16.msra.mxu0 %v838_v55  ;;  %1363 = vmatprep.mubr.msk.bf16.mxu0 %vm1480_vm0, %v1479_v0 }
 0x22e   : > { %1449 = vrcp.f32 %v707_v13  ;;  %v734_v14 = vpack.c.bf16 %v726_v11, %v726_v11  ;;  %1373 = vmatprep.subr.bf16.mxu0 %v1479_v0 }
 0x22f   : > { %v1444_v15 = vpop.eup %1443 }
 0x230   : > { %v727_v16 = vmul.f32 %v1444_v15, %v1611_v32  ;;  %1358 = vmatmul.mubr.msk.bf16.vlgmr.msra.gmra.mrb[16].mxu1 %vm644_vm2, %v734_v14 }
 0x231   : > { %1368 = vmatpush3.bf16.msra.mxu1 %v884_v57  ;;  %1369 = vmatprep.mubr.msk.bf16.mxu1 %vm1480_vm0, %v1479_v0 }
 0x232   : > { %v735_v17 = vpack.c.bf16 %v727_v16, %v727_v16  ;;  %1379 = vmatprep.subr.bf16.mxu1 %v1479_v0 }
 0x233   : > { %v1446_v18 = vpop.eup %1445 }
 0x234   : > { %v728_v19 = vmul.f32 %v1446_v18, %v1615_v38  ;;  %v716_v20 = vpop.xlane.xlu1 %715  ;;  %1364 = vmatmul.mubr.msk.bf16.vlgmr.msra.gmra.mrb[20].mxu0 %vm644_vm2, %v735_v17 }
 0x235   : > { %1451 = vrcp.f32 %v716_v20  ;;  %v713_v21 = vpop.xlane.xlu0 %712  ;;  %1374 = vmatpush3.bf16.msra.mxu0 %v930_v59  ;;  %1375 = vmatprep.mubr.msk.bf16.mxu0 %vm1480_vm0, %v1479_v0 }
 0x236   : > { %1453 = vrcp.f32 %v713_v21  ;;  %v736_v22 = vpack.c.bf16 %v728_v19, %v728_v19  ;;  %1385 = vmatprep.subr.bf16.mxu0 %v1479_v0 }
 0x237   : > { %v1448_v23 = vpop.eup %1447 }
 0x238   : > { %v1450_v24 = vpop.eup %1449  ;;  %1370 = vmatmul.mubr.msk.bf16.vlgmr.msra.gmra.mrb[20].mxu1 %vm644_vm2, %v736_v22  ;;  %v730_v26 = vmul.f32 %v1448_v23, %v1619_v42 }
 0x239   : > { %v729_v25 = vmul.f32 %v1450_v24, %v1621_v43  ;;  %1380 = vmatpush3.bf16.msra.mxu1 %v976_v61  ;;  %1381 = vmatprep.mubr.msk.bf16.mxu1 %vm1480_vm0, %v1479_v0 }
 0x23a   : > { %1391 = vmatprep.subr.bf16.mxu1 %v1479_v0  ;;  %v738_v28 = vpack.c.bf16 %v730_v26, %v730_v26 }
 0x23b   : > { %v737_v27 = vpack.c.bf16 %v729_v25, %v729_v25 }
 0x23d   : > { %1376 = vmatmul.mubr.msk.bf16.vlgmr.msra.gmra.mrb[24].mxu0 %vm644_vm2, %v737_v27 }
 0x23e   : > { %1386 = vmatpush3.bf16.msra.mxu0 %v1022_v63  ;;  %1387 = vmatprep.mubr.msk.bf16.mxu0 %vm1480_vm0, %v1479_v0 }
 0x23f   : > { %v1452_v29 = vpop.eup %1451 }
 0x240   : > { %v1454_v30 = vpop.eup %1453  ;;  %1382 = vmatmul.mubr.msk.bf16.vlgmr.msra.gmra.mrb[24].mxu1 %vm644_vm2, %v738_v28  ;;  %v732_v32 = vmul.f32 %v1452_v29, %v1627_v46 }
 0x241   : > { %v731_v31 = vmul.f32 %v1454_v30, %v1629_v47  ;;  %1392 = vmatpush3.bf16.msra.mxu1 %v1068_v2  ;;  %1393 = vmatprep.mubr.msk.bf16.mxu1 %vm1480_vm0, %v1479_v0 }
 0x242   : > { %v740_v34 = vpack.c.bf16 %v732_v32, %v732_v32 }
 0x243   : > { %v739_v33 = vpack.c.bf16 %v731_v31, %v731_v31 }
 0x245   : > { %1388 = vmatmul.mubr.msk.bf16.vlgmr.msra.gmra.mrb[28].mxu0 %vm644_vm2, %v739_v33 }
 0x248   : > { %1394 = vmatmul.mubr.msk.bf16.vlgmr.msra.gmra.mrb[28].mxu1 %vm644_vm2, %v740_v34 }
 0x2ff   : > { %v782_v35 = vpop.f32.mrb[16].mxu0 }
 0x300   : > { %v1110_v36 = vpack.c.bf16 %v782_v35, %v782_v35  ;;  %v1353_v0 = vpop.f32.mrb[17].mxu0 }
 0x301   : > { %v785_v37 = vpop.f32.mrb[18].mxu0 }
 0x302   : > { %1119 = vst.msk [vmem:[%s1685_s28] sm:$0xf] %vm1118_vm4, %v1110_v36  ;;  %v1354_v38 = vpop.f32.mrb[19].mxu0 }
 0x303   : > { %v828_v39 = vpop.f32.mrb[16].mxu1 }
 0x304   : > { %v1111_v40 = vpack.c.bf16 %v828_v39, %v828_v39  ;;  %v1359_v41 = vpop.f32.mrb[17].mxu1 }
 0x305   : > { %v831_v42 = vpop.f32.mrb[18].mxu1 }
 0x306   : > { %1120 = vst.msk [vmem:[%s1685_s28 + $0x4] sm:$0xf] %vm1118_vm4, %v1111_v40  ;;  %v1360_v43 = vpop.f32.mrb[19].mxu1 }
 0x307   : > { %v874_v44 = vpop.f32.mrb[20].mxu0 }
 0x308   : > { %v1112_v45 = vpack.c.bf16 %v874_v44, %v874_v44  ;;  %v1365_v46 = vpop.f32.mrb[21].mxu0 }
 0x309   : > { %v877_v47 = vpop.f32.mrb[22].mxu0 }
 0x30a   : > { %1121 = vst.msk [vmem:[%s1685_s28 + $0x8] sm:$0xf] %vm1118_vm4, %v1112_v45  ;;  %v1366_v48 = vpop.f32.mrb[23].mxu0 }
 0x30b   : > { %v920_v49 = vpop.f32.mrb[20].mxu1 }
 0x30c   : > { %v1113_v50 = vpack.c.bf16 %v920_v49, %v920_v49  ;;  %v1371_v51 = vpop.f32.mrb[21].mxu1 }
 0x30d   : > { %v923_v52 = vpop.f32.mrb[22].mxu1 }
 0x30e   : > { %1122 = vst.msk [vmem:[%s1685_s28 + $0xc] sm:$0xf] %vm1118_vm4, %v1113_v50  ;;  %v1372_v53 = vpop.f32.mrb[23].mxu1 }
 0x310   : > { %v966_v54 = vpop.f32.mrb[24].mxu0 }
 0x311   : > { %v1114_v55 = vpack.c.bf16 %v966_v54, %v966_v54  ;;  %v1377_v56 = vpop.f32.mrb[25].mxu0 }
 0x312   : > { %v969_v57 = vpop.f32.mrb[26].mxu0 }
 0x313   : > { %1123 = vst.msk [vmem:[%s1685_s28 + $0x10] sm:$0xf] %vm1118_vm4, %v1114_v55  ;;  %v1378_v58 = vpop.f32.mrb[27].mxu0  ;;  %v1012_v59 = vpop.f32.mrb[24].mxu1 }
 0x314   : > { %v1115_v60 = vpack.c.bf16 %v1012_v59, %v1012_v59  ;;  %v1383_v61 = vpop.f32.mrb[25].mxu1 }
 0x315   : > { %v1015_v62 = vpop.f32.mrb[26].mxu1 }
 0x316   : > { %1124 = vst.msk [vmem:[%s1685_s28 + $0x14] sm:$0xf] %vm1118_vm4, %v1115_v60  ;;  %v1384_v63 = vpop.f32.mrb[27].mxu1 }
 0x318   : > { %v1058_v1 = vpop.f32.mrb[28].mxu0 }
 0x319   : > { %v1116_v2 = vpack.c.bf16 %v1058_v1, %v1058_v1  ;;  %v1389_v3 = vpop.f32.mrb[29].mxu0 }
 0x31a   : > { %v1061_v4 = vpop.f32.mrb[30].mxu0 }
 0x31b   : > { %1125 = vst.msk [vmem:[%s1685_s28 + $0x18] sm:$0xf] %vm1118_vm4, %v1116_v2  ;;  %v1390_v5 = vpop.f32.mrb[31].mxu0  ;;  %v1104_v6 = vpop.f32.mrb[28].mxu1 }
 0x31c   : > { %v1117_v7 = vpack.c.bf16 %v1104_v6, %v1104_v6  ;;  %v1395_v8 = vpop.f32.mrb[29].mxu1 }
 0x31d   : > { %v1107_v9 = vpop.f32.mrb[30].mxu1 }
 0x31e   : > { %1126 = vst.msk [vmem:[%s1685_s28 + $0x1c] sm:$0xf] %vm1118_vm4, %v1117_v7  ;;  %v1396_v10 = vpop.f32.mrb[31].mxu1 }
 0x31f PF: > { %s13_s14 = sadd.s32 1, %s1477_s14   ;;  %s1716_s12 = smov %s1473_s13 }
 0x320   : > { %p10_p5 = scmp.ge.s32.totalorder %s13_s14, 4   ;;  %s1717_s13 = smov %s1719_s15 }
 0x322   :  { %12 = sbr.rel (!%p10_p5) target bundleno = 2 (0x2), region = 68 }

</bundles_post_ra>
